<compile_context>
chip_gen: v7x
topology: tpu7x:2x2x1
jax: 0.10.0
libtpu: 0.0.40
codegen_flags: <defaults>
</compile_context>

<pallas_src>
import functools
import math

import jax
import jax.numpy as jnp
from jax.experimental import pallas as pl
from jax.experimental.pallas import tpu as pltpu

_LANE = 128
_DEFAULT_TILE = 512           # near HBM roofline; adaptively shrunk for small graphs
_X_RESIDENT_BYTES = 4 << 20   # keep node features VMEM-resident below this size


def _round_up(x, m):
    return (x + m - 1) // m * m


# ----------------------------------------------------------------------------- kernels
def _gcn_axw_kernel(a_ref, x_ref, w_ref, b_ref, o_ref, acc_ref, rowsum_ref,
                    *, apply_relu, x_resident, tk):
    """Row block of O = A @ (X @ W + b), computed as (A @ X) @ W + rowsum(A) * b.

    Exact for any A (associativity + A @ (1 b) == rowsum(A) * b), so the K-reduction
    inner loop is one MXU accumulate plus a cheap XLU row-sum, and the weight matmul /
    bias / ReLU epilogue runs once per output row block in the finalize step.
    """
    k = pl.program_id(1)

    @pl.when(k == 0)
    def _init():
        acc_ref[...] = jnp.zeros_like(acc_ref)
        rowsum_ref[...] = jnp.zeros_like(rowsum_ref)

    a = a_ref[...]                                      # (TM, TK) bf16 (stored bf16)
    if x_resident:
        off = pl.multiple_of(k * tk, tk)
        x = x_ref[pl.ds(off, tk), :]                    # slice of VMEM-resident X
    else:
        x = x_ref[...]                                  # streamed (TK, Fin) block
    acc_ref[...] += jnp.dot(a, x, preferred_element_type=jnp.float32)
    # Row-sums upcast to f32 so the bias term is exact w.r.t. the stored adjacency.
    rowsum_ref[...] += jnp.sum(a.astype(jnp.float32), axis=1, keepdims=True)

    @pl.when(k == pl.num_programs(1) - 1)
    def _finalize():
        # Keep f32 inputs here: the accumulator magnitude grows with K, and this matmul
        # runs once per row block, so the extra precision is essentially free.
        h = jnp.dot(acc_ref[...], w_ref[...], preferred_element_type=jnp.float32)
        h = h + rowsum_ref[...] * b_ref[...]            # f32 VPU epilogue
        if apply_relu:
            h = jnp.maximum(h, 0.0)
        o_ref[...] = h.astype(o_ref.dtype)              # lane-dense store


def _gcn_agg_kernel(a_ref, y_ref, o_ref, acc_ref, *, apply_relu, x_resident, tk):
    """Row block of O = A @ Y, where Y = X @ W + b was precomputed (narrow output)."""
    k = pl.program_id(1)

    @pl.when(k == 0)
    def _init():
        acc_ref[...] = jnp.zeros_like(acc_ref)

    if x_resident:
        off = pl.multiple_of(k * tk, tk)
        y = y_ref[pl.ds(off, tk), :]
    else:
        y = y_ref[...]
    acc_ref[...] += jnp.dot(a_ref[...], y, preferred_element_type=jnp.float32)

    @pl.when(k == pl.num_programs(1) - 1)
    def _finalize():
        h = acc_ref[...]
        if apply_relu:
            h = jnp.maximum(h, 0.0)
        o_ref[...] = h.astype(o_ref.dtype)


# -------------------------------------------------------------------------- layer calls
def _compiler_params():
    # Row-block axis parallel (v7x megacore), K-reduction axis last & arbitrary.
    # 32 MiB scoped VMEM fits the v7x 64 MiB physical budget with headroom.
    # NOTE: if a profile shows exposed DMA on the A stream at large tk, try
    # pipeline_mode=pl.Buffered(3) on the A BlockSpec (post-structural tweak).
    return pltpu.CompilerParams(
        dimension_semantics=("parallel", "arbitrary"),
        vmem_limit_bytes=32 * 1024 * 1024)


def _gcn_layer_axw(adj_bf16, x_bf16, w_f32, b_f32_2d, *, apply_relu, tm, tk,
                   out_dtype, x_resident_bytes):
    """O = A @ (X @ W + b) with optional fused ReLU.  All dims pre-padded by caller."""
    n = adj_bf16.shape[0]
    f_in = x_bf16.shape[1]
    f_out = w_f32.shape[1]
    grid = (n // tm, n // tk)
    x_resident = n * f_in * 2 <= x_resident_bytes

    if x_resident:
        x_spec = pl.BlockSpec((n, f_in), lambda i, k: (0, 0))    # resident, fetched once
    else:
        x_spec = pl.BlockSpec((tk, f_in), lambda i, k: (k, 0))   # streamed per K block

    x_stream = 1 if x_resident else (n // tm)
    flops = 2 * n * n * f_in + 2 * n * f_in * f_out
    bytes_accessed = int(2 * n * n + 2 * n * f_in * x_stream + 4 * f_in * f_out
                         + 4 * f_out + jnp.dtype(out_dtype).itemsize * n * f_out)

    return pl.pallas_call(
        functools.partial(_gcn_axw_kernel, apply_relu=apply_relu,
                          x_resident=x_resident, tk=tk),
        out_shape=jax.ShapeDtypeStruct((n, f_out), out_dtype),
        grid_spec=pltpu.PrefetchScalarGridSpec(
            num_scalar_prefetch=0,
            grid=grid,
            in_specs=[
                pl.BlockSpec((tm, tk), lambda i, k: (i, k)),       # A tile (bf16)
                x_spec,                                            # X (resident/stream)
                pl.BlockSpec((f_in, f_out), lambda i, k: (0, 0)),  # W (resident)
                pl.BlockSpec((1, f_out), lambda i, k: (0, 0)),     # bias row
            ],
            out_specs=pl.BlockSpec((tm, f_out), lambda i, k: (i, 0)),
            scratch_shapes=[
                pltpu.VMEM((tm, f_in), jnp.float32),               # A@X accumulator
                pltpu.VMEM((tm, 1), jnp.float32),                  # rowsum(A)
            ],
        ),
        compiler_params=_compiler_params(),
        cost_estimate=pl.CostEstimate(
            flops=flops, transcendentals=0, bytes_accessed=bytes_accessed),
    )(adj_bf16, x_bf16, w_f32, b_f32_2d)


def _gcn_layer_agg(adj_bf16, y_bf16, *, apply_relu, tm, tk, out_dtype,
                   x_resident_bytes):
    """O = A @ Y with optional fused ReLU (Y = X @ W + b precomputed, narrow width)."""
    n = adj_bf16.shape[0]
    f = y_bf16.shape[1]
    grid = (n // tm, n // tk)
    x_resident = n * f * 2 <= x_resident_bytes

    if x_resident:
        y_spec = pl.BlockSpec((n, f), lambda i, k: (0, 0))
    else:
        y_spec = pl.BlockSpec((tk, f), lambda i, k: (k, 0))

    y_stream = 1 if x_resident else (n // tm)
    flops = 2 * n * n * f
    bytes_accessed = int(2 * n * n + 2 * n * f * y_stream
                         + jnp.dtype(out_dtype).itemsize * n * f)

    return pl.pallas_call(
        functools.partial(_gcn_agg_kernel, apply_relu=apply_relu,
                          x_resident=x_resident, tk=tk),
        out_shape=jax.ShapeDtypeStruct((n, f), out_dtype),
        grid_spec=pltpu.PrefetchScalarGridSpec(
            num_scalar_prefetch=0,
            grid=grid,
            in_specs=[
                pl.BlockSpec((tm, tk), lambda i, k: (i, k)),       # A tile (bf16)
                y_spec,                                            # Y (resident/stream)
            ],
            out_specs=pl.BlockSpec((tm, f), lambda i, k: (i, 0)),
            scratch_shapes=[pltpu.VMEM((tm, f), jnp.float32)],
        ),
        compiler_params=_compiler_params(),
        cost_estimate=pl.CostEstimate(
            flops=flops, transcendentals=0, bytes_accessed=bytes_accessed),
    )(adj_bf16, y_bf16)


# ------------------------------------------------------------------------------ wrapper
def make_two_layer_gcn(adj, w1, b1, w2, b2, *, tile=_DEFAULT_TILE,
                       x_resident_bytes=_X_RESIDENT_BYTES):
    """One-time prep (pad + bf16 cast of A, pad params) hoisted out of the hot path.

    adj: (N, N) dense normalized adjacency, w*: (in, out) (pre-transposed w.r.t.
    PyTorch's (out, in)), b*: (out,).  Returns a jitted forward(x) for x: (N, in) f32.
    """
    n = adj.shape[0]
    f_in, hid = w1.shape
    f_out = w2.shape[1]

    # Adaptive tiling: big tiles for bandwidth, but never inflate small graphs.
    # (For v7x megacore, large graphs naturally yield >=2 row blocks per core.)
    t = min(tile, _round_up(n, _LANE))
    tm = tk = t
    n_pad = _round_up(n, t)

    f_in_p = _round_up(f_in, _LANE)
    hid_p = _round_up(hid, _LANE)
    f_out_p = _round_up(f_out, _LANE)

    def pad2(a, rows, cols, dtype):
        a = a.astype(dtype)
        return jnp.pad(a, ((0, rows - a.shape[0]), (0, cols - a.shape[1])))

    # Hoisted one-time prep: bf16 adjacency halves the dominant HBM stream.
    adj_p = pad2(adj, n_pad, n_pad, jnp.bfloat16)
    w1_p = pad2(w1, f_in_p, hid_p, jnp.float32)
    w2_p = pad2(w2, hid_p, f_out_p, jnp.float32)
    b1_p = pad2(b1.reshape(1, -1), 1, hid_p, jnp.float32)
    b2_p = pad2(b2.reshape(1, -1), 1, f_out_p, jnp.float32)

    @jax.jit
    def forward(x):
        x_p = pad2(x, n_pad, f_in_p, jnp.float32)

        # ---- layer 1: aggregate at width min(f_in_p, hid_p), fused ReLU, bf16 out.
        if hid_p < f_in_p:
            # Linear reduces the feature dim: pre-apply the tiny X@W1+b1 in XLA and
            # stream only the narrow result through the N^2 aggregation.
            y1 = (x_p @ w1_p + b1_p).astype(jnp.bfloat16)
            h = _gcn_layer_agg(adj_p, y1, apply_relu=True, tm=tm, tk=tk,
                               out_dtype=jnp.bfloat16,
                               x_resident_bytes=x_resident_bytes)
        else:
            h = _gcn_layer_axw(adj_p, x_p.astype(jnp.bfloat16), w1_p, b1_p,
                               apply_relu=True, tm=tm, tk=tk,
                               out_dtype=jnp.bfloat16,
                               x_resident_bytes=x_resident_bytes)

        # ---- layer 2: intermediate h stays bf16 in HBM; final output in f32.
        if f_out_p < hid_p:
            y2 = (h.astype(jnp.float32) @ w2_p + b2_p).astype(jnp.bfloat16)
            out = _gcn_layer_agg(adj_p, y2, apply_relu=False, tm=tm, tk=tk,
                                 out_dtype=jnp.float32,
                                 x_resident_bytes=x_resident_bytes)
        else:
            out = _gcn_layer_axw(adj_p, h, w2_p, b2_p, apply_relu=False,
                                 tm=tm, tk=tk, out_dtype=jnp.float32,
                                 x_resident_bytes=x_resident_bytes)

        return out[:n, :f_out]

    return forward


def _reference(x, adj, w1, b1, w2, b2):
    h = x @ w1 + b1
    h = adj @ h
    h = jnp.maximum(h, 0.0)
    h = h @ w2 + b2
    h = adj @ h
    return h


if __name__ == "__main__":
    # Small synthetic problem: N nodes, in_feats -> hidden_feats -> out_feats.
    # in_feats > hidden exercises the pre-applied-linear (aggregate-only) path for
    # layer 1 and the in-kernel weight path for layer 2.
    N, IN_FEATS, HIDDEN_FEATS, OUT_FEATS = 200, 200, 32, 8

    key = jax.random.PRNGKey(0)
    k_x, k_a, k_w1, k_b1, k_w2, k_b2 = jax.random.split(key, 6)

    # Node features.
    x = jax.random.normal(k_x, (N, IN_FEATS), dtype=jnp.float32)

    # Synthetic graph: random edges + self loops, symmetric, row-normalized
    # (stands in for the sparse `graph` consumed by gspmmv).
    edges = (jax.random.uniform(k_a, (N, N)) < 0.1).astype(jnp.float32)
    edges = jnp.maximum(edges, edges.T) + jnp.eye(N, dtype=jnp.float32)
    deg = jnp.sum(edges, axis=1, keepdims=True)
    adj = edges / deg

    # Parameters (PyTorch Linear: weight (out, in), bias (out,)).
    # Stored pre-transposed as (in, out) so the kernel does h @ W.
    w1 = jax.random.normal(k_w1, (IN_FEATS, HIDDEN_FEATS), dtype=jnp.float32) * 0.1
    b1 = jax.random.normal(k_b1, (HIDDEN_FEATS,), dtype=jnp.float32) * 0.1
    w2 = jax.random.normal(k_w2, (HIDDEN_FEATS, OUT_FEATS), dtype=jnp.float32) * 0.1
    b2 = jax.random.normal(k_b2, (OUT_FEATS,), dtype=jnp.float32) * 0.1

    ref = _reference(x, adj, w1, b1, w2, b2)

    # Config 1: default big tiles (single grid block at this size), VMEM-resident X.
    fwd = make_two_layer_gcn(adj, w1, b1, w2, b2)
    out = jax.block_until_ready(fwd(x))
    assert out.shape == (N, OUT_FEATS)
    assert jnp.allclose(out, ref, atol=1e-2, rtol=1e-2), float(
        jnp.max(jnp.abs(out - ref)))

    # Config 2: small tiles -> (2, 2) grid exercising the K-reduction accumulation,
    # and forced streaming of the node features (x_resident_bytes=0).
    fwd_small = make_two_layer_gcn(adj, w1, b1, w2, b2, tile=128, x_resident_bytes=0)
    out_small = jax.block_until_ready(fwd_small(x))
    assert out_small.shape == (N, OUT_FEATS)
    assert jnp.allclose(out_small, ref, atol=1e-2, rtol=1e-2), float(
        jnp.max(jnp.abs(out_small - ref)))

    print("KERNEL_OK")
</pallas_src>

<mosaic_0001>
module attributes {stable_mosaic.version = 11 : i64} {
  func.func @_gcn_axw_kernel(%arg0: i32, %arg1: i32, %arg2: memref<256x256xbf16, #tpu.memory_space<vmem>>, %arg3: memref<256x128xbf16, #tpu.memory_space<vmem>>, %arg4: memref<128x128xf32, #tpu.memory_space<vmem>>, %arg5: memref<1x128xf32, #tpu.memory_space<vmem>>, %arg6: memref<256x128xf32, #tpu.memory_space<vmem>>, %arg7: memref<256x128xf32, #tpu.memory_space<vmem>>, %arg8: memref<256x1xf32, #tpu.memory_space<vmem>>) attributes {dimension_semantics = [#tpu.dimension_semantics<parallel>, #tpu.dimension_semantics<arbitrary>], iteration_bounds = array<i64: 1, 1>, scalar_prefetch = 0 : i64, scratch_operands = 2 : i64, tpu.core_type = #tpu.core_type<tc>, window_params = [{transform_indices = @transform_0, window_bounds = array<i64: 256, 256>}, {pipeline_mode = #tpu.pipeline_mode<synchronous>, transform_indices = @transform_1, window_bounds = array<i64: 256, 128>}, {pipeline_mode = #tpu.pipeline_mode<synchronous>, transform_indices = @transform_2, window_bounds = array<i64: 128, 128>}, {pipeline_mode = #tpu.pipeline_mode<synchronous>, transform_indices = @transform_3, window_bounds = array<i64: 1, 128>}, {transform_indices = @transform_4, window_bounds = array<i64: 256, 128>}]} {
    %c0_i32 = arith.constant 0 : i32
    %0 = arith.cmpi eq, %arg1, %c0_i32 : i32
    %1 = arith.extui %0 : i1 to i32
    %c0_i32_0 = arith.constant 0 : i32
    %2 = arith.cmpi ne, %1, %c0_i32_0 : i32
    scf.if %2 {
      %cst_14 = arith.constant 0.000000e+00 : f32
      %21 = vector.broadcast %cst_14 : f32 to vector<256x128xf32>
      %c0_15 = arith.constant 0 : index
      %c0_16 = arith.constant 0 : index
      %22 = vector.load %arg7[%c0_15, %c0_16] : memref<256x128xf32, #tpu.memory_space<vmem>>, vector<256x128xf32>
      tpu.vector_store %arg7[%c0_15, %c0_16], %21 {strides = array<i32>} : memref<256x128xf32, #tpu.memory_space<vmem>>, vector<256x128xf32>,
      %cst_17 = arith.constant 0.000000e+00 : f32
      %23 = vector.broadcast %cst_17 : f32 to vector<256x1xf32>
      %c0_18 = arith.constant 0 : index
      %c0_19 = arith.constant 0 : index
      %24 = vector.load %arg8[%c0_18, %c0_19] : memref<256x1xf32, #tpu.memory_space<vmem>>, vector<256x1xf32>
      tpu.vector_store %arg8[%c0_18, %c0_19], %23 {strides = array<i32>} : memref<256x1xf32, #tpu.memory_space<vmem>>, vector<256x1xf32>,
    } else {
    }
    %c0 = arith.constant 0 : index
    %c0_1 = arith.constant 0 : index
    %3 = vector.load %arg2[%c0, %c0_1] : memref<256x256xbf16, #tpu.memory_space<vmem>>, vector<256x256xbf16>
    %c256_i32 = arith.constant 256 : i32
    %4 = arith.muli %arg1, %c256_i32 : i32
    %5 = tpu.assume_multiple %4, 256 : i32
    %6 = arith.index_cast %5 : i32 to index
    %c0_2 = arith.constant 0 : index
    %7 = vector.load %arg3[%6, %c0_2] : memref<256x128xbf16, #tpu.memory_space<vmem>>, vector<256x128xbf16>
    %c0_3 = arith.constant 0 : index
    %c0_4 = arith.constant 0 : index
    %8 = vector.load %arg7[%c0_3, %c0_4] : memref<256x128xf32, #tpu.memory_space<vmem>>, vector<256x128xf32>
    %cst = arith.constant dense<0.000000e+00> : vector<256x128xf32>
    %9 = tpu.matmul %3, %7, %cst {dimension_numbers = #tpu.dot_dimension_numbers<[1], [0], [0], [1], [0, 0, 1, 1], [], []>} : vector<256x256xbf16>, vector<256x128xbf16>, vector<256x128xf32> -> vector<256x128xf32>
    %10 = arith.addf %8, %9 : vector<256x128xf32>
    %c0_5 = arith.constant 0 : index
    %c0_6 = arith.constant 0 : index
    %11 = vector.load %arg7[%c0_5, %c0_6] : memref<256x128xf32, #tpu.memory_space<vmem>>, vector<256x128xf32>
    tpu.vector_store %arg7[%c0_5, %c0_6], %10 {strides = array<i32>} : memref<256x128xf32, #tpu.memory_space<vmem>>, vector<256x128xf32>,
    %c0_7 = arith.constant 0 : index
    %c0_8 = arith.constant 0 : index
    %12 = vector.load %arg8[%c0_7, %c0_8] : memref<256x1xf32, #tpu.memory_space<vmem>>, vector<256x1xf32>
    %13 = arith.extf %3 : vector<256x256xbf16> to vector<256x256xf32>
    %cst_9 = arith.constant dense<0.000000e+00> : vector<256xf32>
    %14 = vector.multi_reduction <add>, %13, %cst_9 [1] : vector<256x256xf32> to vector<256xf32>
    %15 = vector.shape_cast %14 : vector<256xf32> to vector<256x1xf32>
    %16 = arith.addf %12, %15 : vector<256x1xf32>
    %c0_10 = arith.constant 0 : index
    %c0_11 = arith.constant 0 : index
    %17 = vector.load %arg8[%c0_10, %c0_11] : memref<256x1xf32, #tpu.memory_space<vmem>>, vector<256x1xf32>
    tpu.vector_store %arg8[%c0_10, %c0_11], %16 {strides = array<i32>} : memref<256x1xf32, #tpu.memory_space<vmem>>, vector<256x1xf32>,
    %c0_i32_12 = arith.constant 0 : i32
    %18 = arith.cmpi eq, %arg1, %c0_i32_12 : i32
    %19 = arith.extui %18 : i1 to i32
    %c0_i32_13 = arith.constant 0 : i32
    %20 = arith.cmpi ne, %19, %c0_i32_13 : i32
    scf.if %20 {
      %c0_14 = arith.constant 0 : index
      %c0_15 = arith.constant 0 : index
      %21 = vector.load %arg7[%c0_14, %c0_15] : memref<256x128xf32, #tpu.memory_space<vmem>>, vector<256x128xf32>
      %c0_16 = arith.constant 0 : index
      %c0_17 = arith.constant 0 : index
      %22 = vector.load %arg4[%c0_16, %c0_17] : memref<128x128xf32, #tpu.memory_space<vmem>>, vector<128x128xf32>
      %cst_18 = arith.constant dense<0.000000e+00> : vector<256x128xf32>
      %23 = tpu.matmul %21, %22, %cst_18 {dimension_numbers = #tpu.dot_dimension_numbers<[1], [0], [0], [1], [0, 0, 1, 1], [], []>} : vector<256x128xf32>, vector<128x128xf32>, vector<256x128xf32> -> vector<256x128xf32>
      %c0_19 = arith.constant 0 : index
      %c0_20 = arith.constant 0 : index
      %24 = vector.load %arg8[%c0_19, %c0_20] : memref<256x1xf32, #tpu.memory_space<vmem>>, vector<256x1xf32>
      %c0_21 = arith.constant 0 : index
      %c0_22 = arith.constant 0 : index
      %25 = vector.load %arg5[%c0_21, %c0_22] : memref<1x128xf32, #tpu.memory_space<vmem>>, vector<1x128xf32>
      %26 = vector.broadcast %24 : vector<256x1xf32> to vector<256x128xf32>
      %27 = vector.broadcast %25 : vector<1x128xf32> to vector<256x128xf32>
      %28 = arith.mulf %26, %27 : vector<256x128xf32>
      %29 = arith.addf %23, %28 : vector<256x128xf32>
      %c0_23 = arith.constant 0 : index
      %c0_24 = arith.constant 0 : index
      %30 = vector.load %arg6[%c0_23, %c0_24] : memref<256x128xf32, #tpu.memory_space<vmem>>, vector<256x128xf32>
      tpu.vector_store %arg6[%c0_23, %c0_24], %29 {strides = array<i32>} : memref<256x128xf32, #tpu.memory_space<vmem>>, vector<256x128xf32>,
    } else {
    }
    return
  }
  func.func @transform_0(%arg0: i32, %arg1: i32) -> (i32, i32) {
    %c0_i32 = arith.constant 0 : i32
    return %arg0, %arg1 : i32, i32
  }
  func.func @transform_1(%arg0: i32, %arg1: i32) -> (i32, i32) {
    %c0_i32 = arith.constant 0 : i32
    %c0_i32_0 = arith.constant 0 : i32
    %c0_i32_1 = arith.constant 0 : i32
    return %c0_i32, %c0_i32_0 : i32, i32
  }
  func.func @transform_2(%arg0: i32, %arg1: i32) -> (i32, i32) {
    %c0_i32 = arith.constant 0 : i32
    %c0_i32_0 = arith.constant 0 : i32
    %c0_i32_1 = arith.constant 0 : i32
    return %c0_i32, %c0_i32_0 : i32, i32
  }
  func.func @transform_3(%arg0: i32, %arg1: i32) -> (i32, i32) {
    %c0_i32 = arith.constant 0 : i32
    %c0_i32_0 = arith.constant 0 : i32
    %c0_i32_1 = arith.constant 0 : i32
    return %c0_i32, %c0_i32_0 : i32, i32
  }
  func.func @transform_4(%arg0: i32, %arg1: i32) -> (i32, i32) {
    %c0_i32 = arith.constant 0 : i32
    %c0_i32_0 = arith.constant 0 : i32
    return %arg0, %c0_i32 : i32, i32
  }
}

module attributes {stable_mosaic.version = 11 : i64} {
  func.func @_gcn_agg_kernel(%arg0: i32, %arg1: i32, %arg2: memref<256x256xbf16, #tpu.memory_space<vmem>>, %arg3: memref<256x128xbf16, #tpu.memory_space<vmem>>, %arg4: memref<256x128xbf16, #tpu.memory_space<vmem>>, %arg5: memref<256x128xf32, #tpu.memory_space<vmem>>) attributes {dimension_semantics = [#tpu.dimension_semantics<parallel>, #tpu.dimension_semantics<arbitrary>], iteration_bounds = array<i64: 1, 1>, scalar_prefetch = 0 : i64, scratch_operands = 1 : i64, tpu.core_type = #tpu.core_type<tc>, window_params = [{transform_indices = @transform_0, window_bounds = array<i64: 256, 256>}, {pipeline_mode = #tpu.pipeline_mode<synchronous>, transform_indices = @transform_1, window_bounds = array<i64: 256, 128>}, {transform_indices = @transform_2, window_bounds = array<i64: 256, 128>}]} {
    %c0_i32 = arith.constant 0 : i32
    %0 = arith.cmpi eq, %arg1, %c0_i32 : i32
    %1 = arith.extui %0 : i1 to i32
    %c0_i32_0 = arith.constant 0 : i32
    %2 = arith.cmpi ne, %1, %c0_i32_0 : i32
    scf.if %2 {
      %cst_9 = arith.constant 0.000000e+00 : f32
      %15 = vector.broadcast %cst_9 : f32 to vector<256x128xf32>
      %c0_10 = arith.constant 0 : index
      %c0_11 = arith.constant 0 : index
      %16 = vector.load %arg5[%c0_10, %c0_11] : memref<256x128xf32, #tpu.memory_space<vmem>>, vector<256x128xf32>
      tpu.vector_store %arg5[%c0_10, %c0_11], %15 {strides = array<i32>} : memref<256x128xf32, #tpu.memory_space<vmem>>, vector<256x128xf32>,
    } else {
    }
    %c256_i32 = arith.constant 256 : i32
    %3 = arith.muli %arg1, %c256_i32 : i32
    %4 = tpu.assume_multiple %3, 256 : i32
    %5 = arith.index_cast %4 : i32 to index
    %c0 = arith.constant 0 : index
    %6 = vector.load %arg3[%5, %c0] : memref<256x128xbf16, #tpu.memory_space<vmem>>, vector<256x128xbf16>
    %c0_1 = arith.constant 0 : index
    %c0_2 = arith.constant 0 : index
    %7 = vector.load %arg5[%c0_1, %c0_2] : memref<256x128xf32, #tpu.memory_space<vmem>>, vector<256x128xf32>
    %c0_3 = arith.constant 0 : index
    %c0_4 = arith.constant 0 : index
    %8 = vector.load %arg2[%c0_3, %c0_4] : memref<256x256xbf16, #tpu.memory_space<vmem>>, vector<256x256xbf16>
    %cst = arith.constant dense<0.000000e+00> : vector<256x128xf32>
    %9 = tpu.matmul %8, %6, %cst {dimension_numbers = #tpu.dot_dimension_numbers<[1], [0], [0], [1], [0, 0, 1, 1], [], []>} : vector<256x256xbf16>, vector<256x128xbf16>, vector<256x128xf32> -> vector<256x128xf32>
    %10 = arith.addf %7, %9 : vector<256x128xf32>
    %c0_5 = arith.constant 0 : index
    %c0_6 = arith.constant 0 : index
    %11 = vector.load %arg5[%c0_5, %c0_6] : memref<256x128xf32, #tpu.memory_space<vmem>>, vector<256x128xf32>
    tpu.vector_store %arg5[%c0_5, %c0_6], %10 {strides = array<i32>} : memref<256x128xf32, #tpu.memory_space<vmem>>, vector<256x128xf32>,
    %c0_i32_7 = arith.constant 0 : i32
    %12 = arith.cmpi eq, %arg1, %c0_i32_7 : i32
    %13 = arith.extui %12 : i1 to i32
    %c0_i32_8 = arith.constant 0 : i32
    %14 = arith.cmpi ne, %13, %c0_i32_8 : i32
    scf.if %14 {
      %c0_9 = arith.constant 0 : index
      %c0_10 = arith.constant 0 : index
      %15 = vector.load %arg5[%c0_9, %c0_10] : memref<256x128xf32, #tpu.memory_space<vmem>>, vector<256x128xf32>
      %cst_11 = arith.constant 0.000000e+00 : f32
      %16 = vector.broadcast %cst_11 : f32 to vector<256x128xf32>
      %17 = arith.maximumf %15, %16 : vector<256x128xf32>
      %18 = arith.truncf %17 : vector<256x128xf32> to vector<256x128xbf16>
      %c0_12 = arith.constant 0 : index
      %c0_13 = arith.constant 0 : index
      %19 = vector.load %arg4[%c0_12, %c0_13] : memref<256x128xbf16, #tpu.memory_space<vmem>>, vector<256x128xbf16>
      tpu.vector_store %arg4[%c0_12, %c0_13], %18 {strides = array<i32>} : memref<256x128xbf16, #tpu.memory_space<vmem>>, vector<256x128xbf16>,
    } else {
    }
    return
  }
  func.func @transform_0(%arg0: i32, %arg1: i32) -> (i32, i32) {
    %c0_i32 = arith.constant 0 : i32
    return %arg0, %arg1 : i32, i32
  }
  func.func @transform_1(%arg0: i32, %arg1: i32) -> (i32, i32) {
    %c0_i32 = arith.constant 0 : i32
    %c0_i32_0 = arith.constant 0 : i32
    %c0_i32_1 = arith.constant 0 : i32
    return %c0_i32, %c0_i32_0 : i32, i32
  }
  func.func @transform_2(%arg0: i32, %arg1: i32) -> (i32, i32) {
    %c0_i32 = arith.constant 0 : i32
    %c0_i32_0 = arith.constant 0 : i32
    return %arg0, %c0_i32 : i32, i32
  }
}

</mosaic_0001>

<bundles_post_ra>
// kernel: forward.3
= control target key start
LH: loop header
LB: loop body
LE: loop exit
PB: predicated region body
PF: predicated region fallthrough
CT: control target
= control target key end

     0   :  { %vm54_vm0 = vcmask 7168   ;;  %s2492_s1 = inlined_call_operand.vmem [shape: bf16[256,128], index: 1, kind: input, shape index: {}]   ;;  %s2493_s0 = inlined_call_operand.vmem [shape: bf16[256,256], index: 0, kind: input, shape index: {}]   ;;  %s2494_s2 = inlined_call_operand.vmem [shape: f32[128,128], index: 2, kind: input, shape index: {}]   ;;  %s2495_s3 = inlined_call_operand.vmem [shape: f32[1,128], index: 3, kind: input, shape index: {}]   ;;  %s2496_s4 = inlined_call_operand.vmem [shape: f32[256,128], index: 4, kind: output, shape index: {}]  }
   0x1   :  { %v1812_v0 = vld [vmem:[%s2492_s1 + $0x40] sm:$0xff]   ;;  %v1814_v2 = vld [vmem:[%s2492_s1 + $0x48] sm:$0xff]   ;;  %v1816_v4 = vld [vmem:[%s2492_s1 + $0x50] sm:$0xff]  }
   0x2   :  { %v1813_v1 = vld [vmem:[%s2492_s1] sm:$0xff]   ;;  %1520 = vmatprep.subr.bf16.mxu0 %v1812_v0  ;;  %1792 = vmatprep.subr.bf16.mxu1 %v1812_v0  ;;  %v1815_v3 = vld [vmem:[%s2492_s1 + $0x8] sm:$0xff]   ;;  %v1817_v5 = vld [vmem:[%s2492_s1 + $0x10] sm:$0xff]  }
   0x3   :  { %1521 = vmatpush3.bf16.msra.mxu0 %v1813_v1  ;;  %1800 = vmatpush3.bf16.msra.mxu1 %v1813_v1  ;;  %v1818_v6 = vld [vmem:[%s2492_s1 + $0x58] sm:$0xff]   ;;  %v1820_v8 = vld [vmem:[%s2492_s1 + $0x60] sm:$0xff]   ;;  %v1822_v10 = vld [vmem:[%s2492_s1 + $0x68] sm:$0xff]  }
   0x4   :  { %1522 = vmatprep.subr.bf16.mxu0 %v1814_v2  ;;  %1793 = vmatprep.subr.bf16.mxu1 %v1814_v2  ;;  %v1819_v7 = vld [vmem:[%s2492_s1 + $0x18] sm:$0xff]   ;;  %v1821_v9 = vld [vmem:[%s2492_s1 + $0x20] sm:$0xff]   ;;  %v1928_v12 = vld [vmem:[%s2493_s0 + $0x8] sm:$0xff] }
   0x5   :  { %v1923_v11 = vld [vmem:[%s2493_s0] sm:$0xff]  ;;  %v1823_v16 = vld [vmem:[%s2492_s1 + $0x28] sm:$0xff]   ;;  %v703_v18 = vunpack.c.l.bf16 %v1928_v12  ;;  %v1824_v19 = vld [vmem:[%s2492_s1 + $0x70] sm:$0xff]   ;;  %v704_v21 = vunpack.c.h.bf16 %v1928_v12 }
   0x6   :  { %v1472_v13 = vcombine.high %v1923_v11, %v1928_v12  ;;  %v701_v14 = vunpack.c.l.bf16 %v1923_v11  ;;  %v702_v15 = vunpack.c.h.bf16 %v1923_v11  ;;  %v1944_v20 = vld [vmem:[%s2493_s0 + $0x10] sm:$0xff]  ;;  %v1951_v23 = vld [vmem:[%s2493_s0 + $0xc0] sm:$0xff]  ;;  %v1959_v25 = vld [vmem:[%s2493_s0 + $0xc8] sm:$0xff]  ;;  %v1471_v45 = vcombine.low %v1923_v11, %v1928_v12 }
   0x7   :  { %1523 = vmatpush3.bf16.msra.mxu0 %v1815_v3  ;;  %1801 = vmatpush3.bf16.msra.mxu1 %v1815_v3  ;;  %v705_v22 = vunpack.c.l.bf16 %v1944_v20  ;;  %v1825_v24 = vld [vmem:[%s2492_s1 + $0x30] sm:$0xff]   ;;  %v768_v26 = vadd.f32 %v704_v21, %v703_v18  ;;  %v706_v27 = vunpack.c.h.bf16 %v1944_v20  ;;  %v1826_v28 = vld [vmem:[%s2492_s1 + $0x78] sm:$0xff]   ;;  %v1496_v30 = vcombine.high %v1951_v23, %v1959_v25  ;;  %v1976_v33 = vld [vmem:[%s2493_s0 + $0x20] sm:$0xff] }
   0x8   :  { %1524 = vmatprep.subr.bf16.mxu0 %v1816_v4  ;;  %1794 = vmatprep.subr.bf16.mxu1 %v1816_v4  ;;  %v765_v17 = vadd.f32 %v702_v15, %v701_v14  ;;  %v1968_v29 = vld [vmem:[%s2493_s0 + $0x18] sm:$0xff]  ;;  %v1985_v36 = vld [vmem:[%s2493_s0 + $0x28] sm:$0xff]  ;;  %v709_v37 = vunpack.c.l.bf16 %v1976_v33  ;;  %v1991_v38 = vld [vmem:[%s2493_s0 + $0x30] sm:$0xff]  ;;  %v710_v40 = vunpack.c.h.bf16 %v1976_v33  ;;  %v1495_v55 = vcombine.low %v1951_v23, %v1959_v25 }
   0x9   :  { %476 = vmatprep.mubr.bf16.mxu0 %v1472_v13  ;;  %v771_v31 = vadd.f32 %v706_v27, %v705_v22  ;;  %v707_v32 = vunpack.c.l.bf16 %v1968_v29  ;;  %572 = vmatprep.mubr.bf16.mxu1 %v1496_v30  ;;  %v708_v34 = vunpack.c.h.bf16 %v1968_v29  ;;  %v1827_v35 = vld [vmem:[%s2492_s1 + $0x38] sm:$0xff]   ;;  %v711_v41 = vunpack.c.l.bf16 %v1985_v36  ;;  %v2008_v47 = vld [vmem:[%s2493_s0 + $0xd0] sm:$0xff]  ;;  %v2020_v51 = vld [vmem:[%s2493_s0 + $0x40] sm:$0xff] }
   0xa   :  { %766 = vadd.xlane.f32.xlu0 %v765_v17  ;;  %v712_v42 = vunpack.c.h.bf16 %v1985_v36  ;;  %v713_v43 = vunpack.c.l.bf16 %v1991_v38  ;;  %v714_v44 = vunpack.c.h.bf16 %v1991_v38  ;;  %v2003_v46 = vld [vmem:[%s2493_s0 + $0x38] sm:$0xff]  ;;  %v777_v49 = vadd.f32 %v710_v40, %v709_v37  ;;  %v2033_v60 = vld [vmem:[%s2493_s0 + $0x48] sm:$0xff]  ;;  %v2038_v61 = vld [vmem:[%s2493_s0 + $0x50] sm:$0xff] }
   0xb   :  { %1525 = vmatpush3.bf16.msra.mxu0 %v1817_v5  ;;  %1802 = vmatpush3.bf16.msra.mxu1 %v1817_v5  ;;  %v774_v39 = vadd.f32 %v708_v34, %v707_v32  ;;  %v2013_v48 = vld [vmem:[%s2493_s0 + $0xd8] sm:$0xff]  ;;  %v1474_v50 = vcombine.high %v1944_v20, %v1968_v29  ;;  %v715_v53 = vunpack.c.l.bf16 %v2003_v46  ;;  %v716_v54 = vunpack.c.h.bf16 %v2003_v46  ;;  %v961_v18 = vld [vmem:[%s2494_s2] sm:$0xff]  ;;  %v963_v21 = vld [vmem:[%s2494_s2 + $0x10] sm:$0xff] }
   0xc   :  { %1526 = vmatprep.subr.bf16.mxu0 %v1818_v6  ;;  %1795 = vmatprep.subr.bf16.mxu1 %v1818_v6  ;;  %v780_v52 = vadd.f32 %v712_v42, %v711_v41  ;;  %v783_v56 = vadd.f32 %v714_v44, %v713_v43  ;;  %v717_v57 = vunpack.c.l.bf16 %v2020_v51  ;;  %v718_v58 = vunpack.c.h.bf16 %v2020_v51  ;;  %v2049_v5 = vld [vmem:[%s2493_s0 + $0x58] sm:$0xff]  ;;  %v2054_v6 = vld [vmem:[%s2493_s0 + $0xe0] sm:$0xff] }
   0xd   :  { %772 = vadd.xlane.f32.xlu1 %v771_v31  ;;  %v1498_v59 = vcombine.high %v2008_v47, %v2013_v48  ;;  %v786_v62 = vadd.f32 %v716_v54, %v715_v53  ;;  %v719_v63 = vunpack.c.l.bf16 %v2033_v60  ;;  %v720_v0 = vunpack.c.h.bf16 %v2033_v60  ;;  %v964_v22 = vld [vmem:[%s2494_s2 + $0x18] sm:$0xff]  ;;  %v965_v44 = vld [vmem:[%s2494_s2 + $0x20] sm:$0xff] }
   0xe   :  { %769 = vadd.xlane.f32.xlu0 %v768_v26  ;;  %v789_v1 = vadd.f32 %v718_v58, %v717_v57  ;;  %v721_v2 = vunpack.c.l.bf16 %v2038_v61  ;;  %v722_v3 = vunpack.c.h.bf16 %v2038_v61  ;;  %v1473_v4 = vcombine.low %v1944_v20, %v1968_v29  ;;  %v2085_v20 = vld [vmem:[%s2493_s0 + $0x68] sm:$0xff]  ;;  %v2107_v37 = vld [vmem:[%s2493_s0 + $0x78] sm:$0xff]  ;;  %v2148_v57 = vld [vmem:[%s2493_s0 + $0x90] sm:$0xff] }
   0xf   :  { %1527 = vmatpush3.bf16.msra.mxu0 %v1819_v7  ;;  %1803 = vmatpush3.bf16.msra.mxu1 %v1819_v7  ;;  %v2059_v7 = vld [vmem:[%s2493_s0 + $0xe8] sm:$0xff]  ;;  %v723_v11 = vunpack.c.l.bf16 %v2049_v5  ;;  %v724_v12 = vunpack.c.h.bf16 %v2049_v5  ;;  %v1497_v13 = vcombine.low %v2008_v47, %v2013_v48  ;;  %v727_v27 = vunpack.c.l.bf16 %v2085_v20  ;;  %v2117_v40 = vld [vmem:[%s2493_s0 + $0xf8] sm:$0xff] }
  0x10   :  { %1528 = vmatprep.subr.bf16.mxu0 %v1820_v8  ;;  %1796 = vmatprep.subr.bf16.mxu1 %v1820_v8  ;;  %v1476_v8 = vcombine.high %v1976_v33, %v1985_v36  ;;  %v795_v14 = vadd.f32 %v722_v3, %v721_v2  ;;  %v1500_v17 = vcombine.high %v2054_v6, %v2059_v7  ;;  %v731_v42 = vunpack.c.l.bf16 %v2107_v37 }
  0x11   :  { %775 = vadd.xlane.f32.xlu1 %v774_v39  ;;  %v798_v26 = vadd.f32 %v724_v12, %v723_v11  ;;  %v1764_v34 = vpack.c.bf16 %v964_v22, %v963_v21  ;;  %v2112_v39 = vld [vmem:[%s2493_s0 + $0xf0] sm:$0xff]  ;;  %v1478_v41 = vcombine.high %v1991_v38, %v2003_v46  ;;  %v732_v43 = vunpack.c.h.bf16 %v2107_v37  ;;  %v2172_v12 = vld [vmem:[%s2493_s0 + $0xa0] sm:$0xff]  ;;  %v2189_v21 = vld [vmem:[%s2493_s0 + $0xa8] sm:$0xff] }
  0x12   :  { %778 = vadd.xlane.f32.xlu0 %v777_v49  ;;  %v1499_v49 = vcombine.low %v2054_v6, %v2059_v7  ;;  %v1502_v54 = vcombine.high %v2112_v39, %v2117_v40  ;;  %v737_v2 = vunpack.c.l.bf16 %v2148_v57  ;;  %v738_v3 = vunpack.c.h.bf16 %v2148_v57 }
  0x13   :  { %1529 = vmatpush3.bf16.msra.mxu0 %v1821_v9  ;;  %1804 = vmatpush3.bf16.msra.mxu1 %v1821_v9  ;;  %v2066_v9 = vld [vmem:[%s2493_s0 + $0x60] sm:$0xff]  ;;  %v810_v58 = vadd.f32 %v732_v43, %v731_v42  ;;  %v1480_v11 = vcombine.high %v2020_v51, %v2033_v60  ;;  %v1482_v43 = vcombine.high %v2038_v61, %v2049_v5 }
  0x14   :  { %1530 = vmatprep.subr.bf16.mxu0 %v1822_v10  ;;  %1797 = vmatprep.subr.bf16.mxu1 %v1822_v10  ;;  %v792_v10 = vadd.f32 %v720_v0, %v719_v63  ;;  %v725_v15 = vunpack.c.l.bf16 %v2066_v9  ;;  %v967_v63 = vld [vmem:[%s2494_s2 + $0x30] sm:$0xff]  ;;  %v968_v0 = vld [vmem:[%s2494_s2 + $0x38] sm:$0xff] }
  0x15   :  { %781 = vadd.xlane.f32.xlu1 %v780_v52 }
  0x16   :  { %784 = vadd.xlane.f32.xlu0 %v783_v56 }
  0x17   :  { %1531 = vmatpush3.bf16.msra.mxu0 %v1823_v16  ;;  %1805 = vmatpush3.bf16.msra.mxu1 %v1823_v16  ;;  %v726_v16 = vunpack.c.h.bf16 %v2066_v9 }
  0x18   :  { %1532 = vmatprep.subr.bf16.mxu0 %v1824_v19  ;;  %1798 = vmatprep.subr.bf16.mxu1 %v1824_v19  ;;  %v962_v19 = vld [vmem:[%s2494_s2 + $0x8] sm:$0xff] }
  0x19   :  { %787 = vadd.xlane.f32.xlu1 %v786_v62  ;;  %v801_v29 = vadd.f32 %v726_v16, %v725_v15  ;;  %v1760_v32 = vpack.c.bf16 %v962_v19, %v961_v18  ;;  %v970_v15 = vld [vmem:[%s2494_s2 + $0x48] sm:$0xff]  ;;  %v1501_v16 = vcombine.low %v2112_v39, %v2117_v40  ;;  %v741_v18 = vunpack.c.l.bf16 %v2172_v12 }
  0x1a   :  { %790 = vadd.xlane.f32.xlu0 %v789_v1  ;;  %v742_v19 = vunpack.c.h.bf16 %v2172_v12 }
  0x1b   :  { %1533 = vmatpush3.bf16.msra.mxu0 %v1825_v24  ;;  %1806 = vmatpush3.bf16.msra.mxu1 %v1825_v24  ;;  %v2096_v24 = vld [vmem:[%s2493_s0 + $0x70] sm:$0xff] }
  0x1c   :  { %1534 = vmatprep.subr.bf16.mxu0 %v1826_v28  ;;  %1799 = vmatprep.subr.bf16.mxu1 %v1826_v28  ;;  %v728_v28 = vunpack.c.h.bf16 %v2085_v20  ;;  %v729_v30 = vunpack.c.l.bf16 %v2096_v24  ;;  %v730_v31 = vunpack.c.h.bf16 %v2096_v24 }
  0x1d   :  { %793 = vadd.xlane.f32.xlu1 %v792_v10  ;;  %v1772_v10 = vpack.c.bf16 %v968_v0, %v967_v63  ;;  %v753_v63 = vunpack.c.l.bf16 %v2008_v47  ;;  %v754_v0 = vunpack.c.h.bf16 %v2008_v47  ;;  %v758_v47 = vunpack.c.h.bf16 %v2054_v6 }
  0x1e   :  { %796 = vadd.xlane.f32.xlu0 %v795_v14 }
  0x1f   :  { %1535 = vmatpush3.bf16.msra.mxu0 %v1827_v35  ;;  %1807 = vmatpush3.bf16.msra.mxu1 %v1827_v35  ;;  %v1475_v35 = vcombine.low %v1976_v33, %v1985_v36  ;;  %v2124_v33 = vld [vmem:[%s2493_s0 + $0x80] sm:$0xff]  ;;  %v804_v36 = vadd.f32 %v728_v28, %v727_v27  ;;  %v743_v28 = vunpack.c.l.bf16 %v2189_v21 }
  0x20   :  { %1761 = vmatprep.subr.bf16.mxu1 %v1760_v32  ;;  %v733_v52 = vunpack.c.l.bf16 %v2124_v33  ;;  %v734_v53 = vunpack.c.h.bf16 %v2124_v33 }
  0x21   :  { %799 = vadd.xlane.f32.xlu1 %v798_v26  ;;  %v2194_v26 = vld [vmem:[%s2493_s0 + $0xb0] sm:$0xff] }
  0x22   :  { %477 = vmatmul.mubr.bf16.vlgmr.msra.gmra.mrb[0].mxu0 %v1471_v45  ;;  %573 = vmatmul.mubr.bf16.vlgmr.msra.gmra.mrb[0].mxu1 %v1495_v55  ;;  %v966_v45 = vld [vmem:[%s2494_s2 + $0x28] sm:$0xff]  ;;  %v813_v1 = vadd.f32 %v734_v53, %v733_v52  ;;  %v749_v52 = vunpack.c.l.bf16 %v1951_v23  ;;  %v750_v53 = vunpack.c.h.bf16 %v1951_v23  ;;  %v1481_v23 = vcombine.low %v2038_v61, %v2049_v5 }
  0x23   :  { %484 = vmatprep.mubr.bf16.mxu0 %v1474_v50  ;;  %580 = vmatprep.mubr.bf16.mxu1 %v1498_v59  ;;  %v807_v50 = vadd.f32 %v730_v31, %v729_v30  ;;  %v2143_v55 = vld [vmem:[%s2493_s0 + $0x88] sm:$0xff]  ;;  %v1768_v56 = vpack.c.bf16 %v966_v45, %v965_v44  ;;  %v971_v30 = vld [vmem:[%s2494_s2 + $0x50] sm:$0xff]  ;;  %v972_v31 = vld [vmem:[%s2494_s2 + $0x58] sm:$0xff]  ;;  %v759_v5 = vunpack.c.l.bf16 %v2059_v7 }
  0x24   :  { %1763 = vmatpush3.bf16.msra.mxu1 %v1760_v32  ;;  %802 = vadd.xlane.f32.xlu0 %v801_v29  ;;  %v735_v59 = vunpack.c.l.bf16 %v2143_v55  ;;  %v736_v62 = vunpack.c.h.bf16 %v2143_v55  ;;  %v744_v29 = vunpack.c.h.bf16 %v2189_v21  ;;  %v825_v32 = vadd.f32 %v742_v19, %v741_v18 }
  0x25   :  { %1765 = vmatprep.subr.bf16.mxu1 %v1764_v34  ;;  %805 = vadd.xlane.f32.xlu1 %v804_v36  ;;  %v2211_v36 = vld [vmem:[%s2493_s0 + $0xb8] sm:$0xff]  ;;  %v1780_v42 = vpack.c.bf16 %v972_v31, %v971_v30 }
  0x26   :  { %v828_v44 = vadd.f32 %v744_v29, %v743_v28  ;;  %v747_v45 = vunpack.c.l.bf16 %v2211_v36  ;;  %v1494_v19 = vcombine.high %v2194_v26, %v2211_v36  ;;  %v1861_v28 = vmov 0  }
  0x27   :  { %1811 = vset.pattern.permute.xlu1 %v1861_v28  ;;  %1810 = vset.pattern.permute.xlu0 %v1861_v28 }
  0x28   :  { %808 = vadd.xlane.f32.xlu0 %v807_v50  ;;  %1767 = vmatpush3.bf16.msra.mxu1 %v1764_v34  ;;  %v745_v34 = vunpack.c.l.bf16 %v2194_v26 }
  0x29   :  { %1769 = vmatprep.subr.bf16.mxu1 %v1768_v56  ;;  %811 = vadd.xlane.f32.xlu1 %v810_v58  ;;  %v751_v58 = vunpack.c.l.bf16 %v1959_v25 }
  0x2a   :  { %485 = vmatmul.mubr.bf16.gmra.mrb[4].mxu0 %v1473_v4  ;;  %581 = vmatmul.mubr.bf16.gmra.mrb[4].mxu1 %v1497_v13  ;;  %v1477_v4 = vcombine.low %v1991_v38, %v2003_v46  ;;  %v816_v13 = vadd.f32 %v736_v62, %v735_v59  ;;  %v969_v46 = vld [vmem:[%s2494_s2 + $0x40] sm:$0xff]  ;;  %v752_v59 = vunpack.c.h.bf16 %v1959_v25  ;;  %v837_v62 = vadd.f32 %v750_v53, %v749_v52 }
  0x2b   :  { %492 = vmatprep.mubr.bf16.mxu0 %v1476_v8  ;;  %588 = vmatprep.mubr.bf16.mxu1 %v1500_v17  ;;  %v2165_v8 = vld [vmem:[%s2493_s0 + $0x98] sm:$0xff]  ;;  %v819_v17 = vadd.f32 %v738_v3, %v737_v2  ;;  %v1776_v22 = vpack.c.bf16 %v970_v15, %v969_v46  ;;  %v755_v3 = vunpack.c.l.bf16 %v2013_v48  ;;  %v756_v25 = vunpack.c.h.bf16 %v2013_v48 }
  0x2c   :  { %v739_v14 = vunpack.c.l.bf16 %v2165_v8  ;;  %v740_v38 = vunpack.c.h.bf16 %v2165_v8  ;;  %814 = vadd.xlane.f32.xlu0 %v813_v1  ;;  %1771 = vmatpush3.bf16.msra.mxu1 %v1768_v56  ;;  %v1484_v1 = vcombine.high %v2066_v9, %v2085_v20  ;;  %v840_v2 = vadd.f32 %v752_v59, %v751_v58 }
  0x2d   :  { %1773 = vmatprep.subr.bf16.mxu1 %v1772_v10  ;;  %817 = vadd.xlane.f32.xlu1 %v816_v13  ;;  %v846_v61 = vadd.f32 %v756_v25, %v755_v3  ;;  %v762_v48 = vunpack.c.h.bf16 %v2112_v39  ;;  %v763_v15 = vunpack.c.l.bf16 %v2117_v40  ;;  %v1489_v18 = vcombine.low %v2148_v57, %v2165_v8 }
  0x2e   :  { %v822_v27 = vadd.f32 %v740_v38, %v739_v14  ;;  %v761_v14 = vunpack.c.l.bf16 %v2112_v39  ;;  %v1483_v38 = vcombine.low %v2066_v9, %v2085_v20  ;;  %v1485_v39 = vcombine.low %v2096_v24, %v2107_v37 }
  0x2f   :  { %v1488_v9 = vcombine.high %v2124_v33, %v2143_v55  ;;  %v1487_v20 = vcombine.low %v2124_v33, %v2143_v55  ;;  %v975_v33 = vld [vmem:[%s2494_s2 + $0x70] sm:$0xff]  ;;  %v976_v55 = vld [vmem:[%s2494_s2 + $0x78] sm:$0xff] }
  0x30   :  { %820 = vadd.xlane.f32.xlu0 %v819_v17  ;;  %1775 = vmatpush3.bf16.msra.mxu1 %v1772_v10  ;;  %v757_v10 = vunpack.c.l.bf16 %v2054_v6  ;;  %v1486_v6 = vcombine.high %v2096_v24, %v2107_v37  ;;  %v1492_v24 = vcombine.high %v2172_v12, %v2189_v21  ;;  %v1491_v37 = vcombine.low %v2172_v12, %v2189_v21 }
  0x31   :  { %1777 = vmatprep.subr.bf16.mxu1 %v1776_v22  ;;  %823 = vadd.xlane.f32.xlu1 %v822_v27  ;;  %v1860_v12 = vmov 0.0  }
  0x32   :  { %493 = vmatmul.mubr.bf16.gmra.mrb[8].mxu0 %v1475_v35  ;;  %589 = vmatmul.mubr.bf16.gmra.mrb[8].mxu1 %v1499_v49  ;;  %v746_v35 = vunpack.c.h.bf16 %v2194_v26  ;;  %v748_v49 = vunpack.c.h.bf16 %v2211_v36  ;;  %v849_v13 = vadd.f32 %v758_v47, %v757_v10  ;;  %55 = vst.msk [vmem:[#allocation3] sm:$0xff] %vm54_vm0, %v1860_v12  ;;  %56 = vst.msk [vmem:[#allocation3 + $0x8] sm:$0xff] %vm54_vm0, %v1860_v12 }
  0x33   :  { %500 = vmatprep.mubr.bf16.mxu0 %v1478_v41  ;;  %596 = vmatprep.mubr.bf16.mxu1 %v1502_v54  ;;  %v1479_v41 = vcombine.low %v2020_v51, %v2033_v60  ;;  %v973_v51 = vld [vmem:[%s2494_s2 + $0x60] sm:$0xff]  ;;  %v974_v60 = vld [vmem:[%s2494_s2 + $0x68] sm:$0xff]  ;;  %57 = vst.msk [vmem:[#allocation3 + $0x10] sm:$0xff] %vm54_vm0, %v1860_v12  ;;  %58 = vst.msk [vmem:[#allocation3 + $0x18] sm:$0xff] %vm54_vm0, %v1860_v12 }
  0x34   :  { %826 = vadd.xlane.f32.xlu0 %v825_v32  ;;  %v831_v50 = vadd.f32 %v746_v35, %v745_v34  ;;  %1779 = vmatpush3.bf16.msra.mxu1 %v1776_v22  ;;  %v1784_v54 = vpack.c.bf16 %v974_v60, %v973_v51  ;;  %v834_v56 = vadd.f32 %v748_v49, %v747_v45 }
  0x35   :  { %1781 = vmatprep.subr.bf16.mxu1 %v1780_v42  ;;  %829 = vadd.xlane.f32.xlu1 %v828_v44  ;;  %59 = vst.msk [vmem:[#allocation3 + $0x20] sm:$0xff] %vm54_vm0, %v1860_v12  ;;  %60 = vst.msk [vmem:[#allocation3 + $0x28] sm:$0xff] %vm54_vm0, %v1860_v12 }
  0x36   :  { %61 = vst.msk [vmem:[#allocation3 + $0x30] sm:$0xff] %vm54_vm0, %v1860_v12  ;;  %62 = vst.msk [vmem:[#allocation3 + $0x38] sm:$0xff] %vm54_vm0, %v1860_v12 }
  0x37   :  { %63 = vst.msk [vmem:[#allocation3 + $0x40] sm:$0xff] %vm54_vm0, %v1860_v12  ;;  %64 = vst.msk [vmem:[#allocation3 + $0x48] sm:$0xff] %vm54_vm0, %v1860_v12 }
  0x38   :  { %832 = vadd.xlane.f32.xlu0 %v831_v50  ;;  %1783 = vmatpush3.bf16.msra.mxu1 %v1780_v42  ;;  %65 = vst.msk [vmem:[#allocation3 + $0x50] sm:$0xff] %vm54_vm0, %v1860_v12  ;;  %66 = vst.msk [vmem:[#allocation3 + $0x58] sm:$0xff] %vm54_vm0, %v1860_v12 }
  0x39   :  { %1785 = vmatprep.subr.bf16.mxu1 %v1784_v54  ;;  %835 = vadd.xlane.f32.xlu1 %v834_v56  ;;  %67 = vst.msk [vmem:[#allocation3 + $0x60] sm:$0xff] %vm54_vm0, %v1860_v12  ;;  %68 = vst.msk [vmem:[#allocation3 + $0x68] sm:$0xff] %vm54_vm0, %v1860_v12  ;;  %v669_v21 = vld [vmem:[#allocation3] sm:$0xff]  ;;  %v670_v27 = vld [vmem:[#allocation3 + $0x8] sm:$0xff] }
  0x3a   :  { %501 = vmatmul.mubr.bf16.gmra.mrb[12].mxu0 %v1477_v4  ;;  %597 = vmatmul.mubr.bf16.gmra.mrb[12].mxu1 %v1501_v16  ;;  %v843_v4 = vadd.f32 %v754_v0, %v753_v63  ;;  %v764_v16 = vunpack.c.h.bf16 %v2117_v40  ;;  %v1490_v40 = vcombine.high %v2148_v57, %v2165_v8  ;;  %v1788_v57 = vpack.c.bf16 %v976_v55, %v975_v33  ;;  %v671_v30 = vld [vmem:[#allocation3 + $0x10] sm:$0xff]  ;;  %v672_v35 = vld [vmem:[#allocation3 + $0x18] sm:$0xff] }
  0x3b   :  { %508 = vmatprep.mubr.bf16.mxu0 %v1480_v11  ;;  %v760_v11 = vunpack.c.h.bf16 %v2059_v7  ;;  %v855_v7 = vadd.f32 %v762_v48, %v761_v14  ;;  %v1493_v8 = vcombine.low %v2194_v26, %v2211_v36  ;;  %69 = vst.msk [vmem:[#allocation3 + $0x70] sm:$0xff] %vm54_vm0, %v1860_v12  ;;  %70 = vst.msk [vmem:[#allocation3 + $0x78] sm:$0xff] %vm54_vm0, %v1860_v12 }
  0x3c   :  { %838 = vadd.xlane.f32.xlu0 %v837_v62  ;;  %1787 = vmatpush3.bf16.msra.mxu1 %v1784_v54  ;;  %v858_v17 = vadd.f32 %v764_v16, %v763_v15  ;;  %71 = vst.msk [vmem:[#allocation3 + $0x80] sm:$0xff] %vm54_vm0, %v1860_v12  ;;  %72 = vst.msk [vmem:[#allocation3 + $0x88] sm:$0xff] %vm54_vm0, %v1860_v12  ;;  %v674_v45 = vld [vmem:[#allocation3 + $0x28] sm:$0xff] }
  0x3d   :  { %841 = vadd.xlane.f32.xlu1 %v840_v2  ;;  %v852_v46 = vadd.f32 %v760_v11, %v759_v5  ;;  %1789 = vmatprep.subr.bf16.mxu1 %v1788_v57  ;;  %73 = vst.msk [vmem:[#allocation3 + $0x90] sm:$0xff] %vm54_vm0, %v1860_v12  ;;  %74 = vst.msk [vmem:[#allocation3 + $0x98] sm:$0xff] %vm54_vm0, %v1860_v12  ;;  %v675_v49 = vld [vmem:[#allocation3 + $0x30] sm:$0xff]  ;;  %v676_v56 = vld [vmem:[#allocation3 + $0x38] sm:$0xff] }
  0x3e   :  { %75 = vst.msk [vmem:[#allocation3 + $0xa0] sm:$0xff] %vm54_vm0, %v1860_v12  ;;  %76 = vst.msk [vmem:[#allocation3 + $0xa8] sm:$0xff] %vm54_vm0, %v1860_v12  ;;  %v677_v63 = vld [vmem:[#allocation3 + $0x40] sm:$0xff] }
  0x3f   :  { %77 = vst.msk [vmem:[#allocation3 + $0xb0] sm:$0xff] %vm54_vm0, %v1860_v12  ;;  %78 = vst.msk [vmem:[#allocation3 + $0xb8] sm:$0xff] %vm54_vm0, %v1860_v12  ;;  %v680_v33 = vld [vmem:[#allocation3 + $0x58] sm:$0xff] }
  0x40   :  { %844 = vadd.xlane.f32.xlu0 %v843_v4  ;;  %1791 = vmatpush3.bf16.msra.mxu1 %v1788_v57  ;;  %79 = vst.msk [vmem:[#allocation3 + $0xc0] sm:$0xff] %vm54_vm0, %v1860_v12  ;;  %80 = vst.msk [vmem:[#allocation3 + $0xc8] sm:$0xff] %vm54_vm0, %v1860_v12  ;;  %v681_v10 = vld [vmem:[#allocation3 + $0x60] sm:$0xff] }
  0x41   :  { %847 = vadd.xlane.f32.xlu1 %v846_v61  ;;  %81 = vst.msk [vmem:[#allocation3 + $0xd0] sm:$0xff] %vm54_vm0, %v1860_v12  ;;  %82 = vst.msk [vmem:[#allocation3 + $0xd8] sm:$0xff] %vm54_vm0, %v1860_v12 }
  0x42   :  { %509 = vmatmul.mubr.bf16.gmra.mrb[16].mxu0 %v1479_v41  ;;  %83 = vst.msk [vmem:[#allocation3 + $0xe0] sm:$0xff] %vm54_vm0, %v1860_v12  ;;  %84 = vst.msk [vmem:[#allocation3 + $0xe8] sm:$0xff] %vm54_vm0, %v1860_v12  ;;  %v673_v41 = vld [vmem:[#allocation3 + $0x20] sm:$0xff]  ;;  %v683_v5 = vld [vmem:[#allocation3 + $0x70] sm:$0xff] }
  0x43   :  { %516 = vmatprep.mubr.bf16.mxu0 %v1482_v43  ;;  %85 = vst.msk [vmem:[#allocation3 + $0xf0] sm:$0xff] %vm54_vm0, %v1860_v12  ;;  %86 = vst.msk [vmem:[#allocation3 + $0xf8] sm:$0xff] %vm54_vm0, %v1860_v12 }
  0x44   :  { %850 = vadd.xlane.f32.xlu0 %v849_v13  ;;  %v687_v15 = vld [vmem:[#allocation3 + $0x90] sm:$0xff] }
  0x45   :  { %853 = vadd.xlane.f32.xlu1 %v852_v46 }
  0x46   :  { %v691_v55 = vld [vmem:[#allocation3 + $0xb0] sm:$0xff] }
  0x48   :  { %856 = vadd.xlane.f32.xlu0 %v855_v7 }
  0x49   :  { %859 = vadd.xlane.f32.xlu1 %v858_v17 }
  0x4a   :  { %517 = vmatmul.mubr.bf16.gmra.mrb[20].mxu0 %v1481_v23 }
  0x4b   :  { %524 = vmatprep.mubr.bf16.mxu0 %v1484_v1  ;;  %v679_v1 = vld [vmem:[#allocation3 + $0x50] sm:$0xff] }
  0x52   :  { %525 = vmatmul.mubr.bf16.gmra.mrb[24].mxu0 %v1483_v38  ;;  %v685_v38 = vld [vmem:[#allocation3 + $0x80] sm:$0xff] }
  0x53   :  { %532 = vmatprep.mubr.bf16.mxu0 %v1486_v6 }
  0x5a   :  { %533 = vmatmul.mubr.bf16.gmra.mrb[28].mxu0 %v1485_v39 }
  0x5b   :  { %540 = vmatprep.mubr.bf16.mxu0 %v1488_v9 }
  0x62   :  { %541 = vmatmul.mubr.bf16.gmra.mrb[32].mxu0 %v1487_v20  ;;  %v678_v20 = vld [vmem:[#allocation3 + $0x48] sm:$0xff] }
  0x63   :  { %548 = vmatprep.mubr.bf16.mxu0 %v1490_v40 }
  0x6a   :  { %549 = vmatmul.mubr.bf16.gmra.mrb[36].mxu0 %v1489_v18  ;;  %v689_v18 = vld [vmem:[#allocation3 + $0xa0] sm:$0xff] }
  0x6b   :  { %556 = vmatprep.mubr.bf16.mxu0 %v1492_v24 }
  0x72   :  { %557 = vmatmul.mubr.bf16.gmra.mrb[40].mxu0 %v1491_v37 }
  0x73   :  { %564 = vmatprep.mubr.bf16.mxu0 %v1494_v19 }
  0x7a   :  { %565 = vmatmul.mubr.bf16.gmra.mrb[44].mxu0 %v1493_v8 }
  0x97   :  { %v767_v22 = vpop.xlane.xlu0 %766 }
  0x98   :  { %v861_v26 = vadd.f32 %v767_v22, %v669_v21 }
  0x9a   :  { %894 = vst.msk [vmem:[#allocation3] sm:$0xff] %vm54_vm0, %v861_v26  ;;  %v773_v32 = vpop.xlane.xlu1 %772  ;;  %v682_v26 = vld [vmem:[#allocation3 + $0x68] sm:$0xff] }
  0x9b   :  { %v770_v29 = vpop.xlane.xlu0 %769  ;;  %v863_v34 = vadd.f32 %v773_v32, %v671_v30 }
  0x9c   :  { %v862_v31 = vadd.f32 %v770_v29, %v670_v27  ;;  %v693_v27 = vld [vmem:[#allocation3 + $0xc0] sm:$0xff] }
  0x9d   :  { %896 = vst.msk [vmem:[#allocation3 + $0x10] sm:$0xff] %vm54_vm0, %v863_v34 }
  0x9e   :  { %895 = vst.msk [vmem:[#allocation3 + $0x8] sm:$0xff] %vm54_vm0, %v862_v31  ;;  %v776_v36 = vpop.xlane.xlu1 %775 }
  0x9f   :  { %v864_v42 = vadd.f32 %v776_v36, %v672_v35  ;;  %v779_v43 = vpop.xlane.xlu0 %778  ;;  %v684_v35 = vld [vmem:[#allocation3 + $0x78] sm:$0xff] }
  0xa0   :  { %v865_v44 = vadd.f32 %v779_v43, %v673_v41  ;;  %v695_v41 = vld [vmem:[#allocation3 + $0xd0] sm:$0xff] }
  0xa1   :  { %897 = vst.msk [vmem:[#allocation3 + $0x18] sm:$0xff] %vm54_vm0, %v864_v42  ;;  %v977_v39 = vld [vmem:[#allocation3] sm:$0xff] }
  0xa2   :  { %898 = vst.msk [vmem:[#allocation3 + $0x20] sm:$0xff] %vm54_vm0, %v865_v44  ;;  %v782_v60 = vpop.xlane.xlu1 %781  ;;  %1012 = vperm.xlu0 %1810, %v977_v39  }
  0xa3   :  { %v866_v50 = vadd.f32 %v782_v60, %v674_v45  ;;  %v785_v52 = vpop.xlane.xlu0 %784  ;;  %v697_v60 = vld [vmem:[#allocation3 + $0xe0] sm:$0xff] }
  0xa4   :  { %v979_v53 = vld [vmem:[#allocation3 + $0x10] sm:$0xff]  ;;  %v867_v54 = vadd.f32 %v785_v52, %v675_v49 }
  0xa5   :  { %v978_v51 = vld [vmem:[#allocation3 + $0x8] sm:$0xff]  ;;  %899 = vst.msk [vmem:[#allocation3 + $0x28] sm:$0xff] %vm54_vm0, %v866_v50 }
  0xa6   :  { %1017 = vperm.xlu1 %1811, %v978_v51   ;;  %900 = vst.msk [vmem:[#allocation3 + $0x30] sm:$0xff] %vm54_vm0, %v867_v54  ;;  %v788_v58 = vpop.xlane.xlu1 %787  ;;  %v686_v51 = vld [vmem:[#allocation3 + $0x88] sm:$0xff] }
  0xa7   :  { %v868_v59 = vadd.f32 %v788_v58, %v676_v56  ;;  %v791_v0 = vpop.xlane.xlu0 %790 }
  0xa8   :  { %v980_v62 = vld [vmem:[#allocation3 + $0x18] sm:$0xff]  ;;  %v869_v23 = vadd.f32 %v791_v0, %v677_v63 }
  0xa9   :  { %901 = vst.msk [vmem:[#allocation3 + $0x38] sm:$0xff] %vm54_vm0, %v868_v59  ;;  %v981_v2 = vld [vmem:[#allocation3 + $0x20] sm:$0xff]  ;;  %v688_v59 = vld [vmem:[#allocation3 + $0x98] sm:$0xff] }
  0xaa   :  { %1022 = vperm.xlu1 %1811, %v979_v53   ;;  %902 = vst.msk [vmem:[#allocation3 + $0x40] sm:$0xff] %vm54_vm0, %v869_v23  ;;  %v794_v40 = vpop.xlane.xlu1 %793 }
  0xab   :  { %v797_v3 = vpop.xlane.xlu0 %796  ;;  %v870_v37 = vadd.f32 %v794_v40, %v678_v20 }
  0xac   :  { %v871_v25 = vadd.f32 %v797_v3, %v679_v1  ;;  %v982_v4 = vld [vmem:[#allocation3 + $0x28] sm:$0xff] }
  0xad   :  { %v983_v11 = vld [vmem:[#allocation3 + $0x30] sm:$0xff]  ;;  %903 = vst.msk [vmem:[#allocation3 + $0x48] sm:$0xff] %vm54_vm0, %v870_v37 }
  0xae   :  { %1027 = vperm.xlu1 %1811, %v980_v62   ;;  %904 = vst.msk [vmem:[#allocation3 + $0x50] sm:$0xff] %vm54_vm0, %v871_v25  ;;  %v800_v8 = vpop.xlane.xlu1 %799  ;;  %v699_v62 = vld [vmem:[#allocation3 + $0xf0] sm:$0xff]  ;;  %v690_v25 = vld [vmem:[#allocation3 + $0xa8] sm:$0xff] }
  0xaf   :  { %v872_v21 = vadd.f32 %v800_v8, %v680_v33 }
  0xb0   :  { %v984_v48 = vld [vmem:[#allocation3 + $0x38] sm:$0xff] }
  0xb1   :  { %v803_v47 = vpop.xlane.xlu0 %802  ;;  %v985_v16 = vld [vmem:[#allocation3 + $0x40] sm:$0xff]  ;;  %905 = vst.msk [vmem:[#allocation3 + $0x58] sm:$0xff] %vm54_vm0, %v872_v21 }
  0xb2   :  { %1032 = vperm.xlu1 %1811, %v981_v2   ;;  %v873_v61 = vadd.f32 %v803_v47, %v681_v10  ;;  %v806_v29 = vpop.xlane.xlu1 %805 }
  0xb3   :  { %v874_v31 = vadd.f32 %v806_v29, %v682_v26 }
  0xb4   :  { %906 = vst.msk [vmem:[#allocation3 + $0x60] sm:$0xff] %vm54_vm0, %v873_v61  ;;  %v986_v34 = vld [vmem:[#allocation3 + $0x48] sm:$0xff] }
  0xb5   :  { %v809_v13 = vpop.xlane.xlu0 %808  ;;  %v987_v9 = vld [vmem:[#allocation3 + $0x50] sm:$0xff]  ;;  %907 = vst.msk [vmem:[#allocation3 + $0x68] sm:$0xff] %vm54_vm0, %v874_v31  ;;  %1057 = vperm.xlu0 %1810, %v986_v34   ;;  %v700_v31 = vld [vmem:[#allocation3 + $0xf8] sm:$0xff] }
  0xb6   :  { %1037 = vperm.xlu1 %1811, %v982_v4   ;;  %v875_v14 = vadd.f32 %v809_v13, %v683_v5  ;;  %v812_v42 = vpop.xlane.xlu1 %811  ;;  %v692_v5 = vld [vmem:[#allocation3 + $0xb8] sm:$0xff] }
  0xb7   :  { %v876_v44 = vadd.f32 %v812_v42, %v684_v35 }
  0xb8   :  { %908 = vst.msk [vmem:[#allocation3 + $0x70] sm:$0xff] %vm54_vm0, %v875_v14  ;;  %v988_v49 = vld [vmem:[#allocation3 + $0x58] sm:$0xff] }
  0xb9   :  { %v815_v6 = vpop.xlane.xlu0 %814  ;;  %909 = vst.msk [vmem:[#allocation3 + $0x78] sm:$0xff] %vm54_vm0, %v876_v44  ;;  %1067 = vperm.xlu0 %1810, %v988_v49  }
  0xba   :  { %1042 = vperm.xlu1 %1811, %v983_v11   ;;  %v877_v46 = vadd.f32 %v815_v6, %v685_v38  ;;  %v818_v52 = vpop.xlane.xlu1 %817  ;;  %v694_v38 = vld [vmem:[#allocation3 + $0xc8] sm:$0xff] }
  0xbb   :  { %v989_v57 = vld [vmem:[#allocation3 + $0x60] sm:$0xff]  ;;  %v878_v54 = vadd.f32 %v818_v52, %v686_v51 }
  0xbc   :  { %910 = vst.msk [vmem:[#allocation3 + $0x80] sm:$0xff] %vm54_vm0, %v877_v46  ;;  %v990_v58 = vld [vmem:[#allocation3 + $0x68] sm:$0xff] }
  0xbd   :  { %v821_v7 = vpop.xlane.xlu0 %820  ;;  %911 = vst.msk [vmem:[#allocation3 + $0x88] sm:$0xff] %vm54_vm0, %v878_v54  ;;  %1077 = vperm.xlu0 %1810, %v990_v58  }
  0xbe   :  { %1047 = vperm.xlu1 %1811, %v984_v48   ;;  %v879_v17 = vadd.f32 %v821_v7, %v687_v15  ;;  %v824_v0 = vpop.xlane.xlu1 %823  ;;  %v696_v7 = vld [vmem:[#allocation3 + $0xd8] sm:$0xff] }
  0xbf   :  { %v991_v28 = vld [vmem:[#allocation3 + $0x70] sm:$0xff]  ;;  %v880_v1 = vadd.f32 %v824_v0, %v688_v59 }
  0xc0   :  { %912 = vst.msk [vmem:[#allocation3 + $0x90] sm:$0xff] %vm54_vm0, %v879_v17  ;;  %v992_v3 = vld [vmem:[#allocation3 + $0x78] sm:$0xff] }
  0xc1   :  { %v827_v24 = vpop.xlane.xlu0 %826  ;;  %913 = vst.msk [vmem:[#allocation3 + $0x98] sm:$0xff] %vm54_vm0, %v880_v1  ;;  %1087 = vperm.xlu0 %1810, %v992_v3  }
  0xc2   :  { %1052 = vperm.xlu1 %1811, %v985_v16   ;;  %v881_v19 = vadd.f32 %v827_v24, %v689_v18  ;;  %v830_v10 = vpop.xlane.xlu1 %829 }
  0xc3   :  { %v993_v36 = vld [vmem:[#allocation3 + $0x80] sm:$0xff]  ;;  %v882_v47 = vadd.f32 %v830_v10, %v690_v25 }
  0xc4   :  { %914 = vst.msk [vmem:[#allocation3 + $0xa0] sm:$0xff] %vm54_vm0, %v881_v19  ;;  %v994_v61 = vld [vmem:[#allocation3 + $0x88] sm:$0xff] }
  0xc5   :  { %v833_v12 = vpop.xlane.xlu0 %832  ;;  %915 = vst.msk [vmem:[#allocation3 + $0xa8] sm:$0xff] %vm54_vm0, %v882_v47  ;;  %1097 = vperm.xlu0 %1810, %v994_v61  }
  0xc6   :  { %1062 = vperm.xlu1 %1811, %v987_v9   ;;  %v883_v22 = vadd.f32 %v833_v12, %v691_v55  ;;  %v836_v13 = vpop.xlane.xlu1 %835  ;;  %v698_v55 = vld [vmem:[#allocation3 + $0xe8] sm:$0xff] }
  0xc7   :  { %v995_v50 = vld [vmem:[#allocation3 + $0x90] sm:$0xff]  ;;  %v884_v14 = vadd.f32 %v836_v13, %v692_v5 }
  0xc8   :  { %916 = vst.msk [vmem:[#allocation3 + $0xb0] sm:$0xff] %vm54_vm0, %v883_v22  ;;  %v996_v48 = vld [vmem:[#allocation3 + $0x98] sm:$0xff] }
  0xc9   :  { %v839_v30 = vpop.xlane.xlu0 %838  ;;  %917 = vst.msk [vmem:[#allocation3 + $0xb8] sm:$0xff] %vm54_vm0, %v884_v14  ;;  %1107 = vperm.xlu0 %1810, %v996_v48  }
  0xca   :  { %1072 = vperm.xlu1 %1811, %v989_v57   ;;  %v885_v32 = vadd.f32 %v839_v30, %v693_v27  ;;  %v842_v46 = vpop.xlane.xlu1 %841 }
  0xcb   :  { %v997_v63 = vld [vmem:[#allocation3 + $0xa0] sm:$0xff]  ;;  %v886_v15 = vadd.f32 %v842_v46, %v694_v38 }
  0xcc   :  { %918 = vst.msk [vmem:[#allocation3 + $0xc0] sm:$0xff] %vm54_vm0, %v885_v32  ;;  %v998_v16 = vld [vmem:[#allocation3 + $0xa8] sm:$0xff] }
  0xcd   :  { %v845_v43 = vpop.xlane.xlu0 %844  ;;  %919 = vst.msk [vmem:[#allocation3 + $0xc8] sm:$0xff] %vm54_vm0, %v886_v15  ;;  %1117 = vperm.xlu0 %1810, %v998_v16  }
  0xce   :  { %1082 = vperm.xlu1 %1811, %v991_v28   ;;  %v887_v45 = vadd.f32 %v845_v43, %v695_v41  ;;  %v848_v39 = vpop.xlane.xlu1 %847 }
  0xcf   :  { %v999_v4 = vld [vmem:[#allocation3 + $0xb0] sm:$0xff]  ;;  %v888_v9 = vadd.f32 %v848_v39, %v696_v7 }
  0xd0   :  { %920 = vst.msk [vmem:[#allocation3 + $0xd0] sm:$0xff] %vm54_vm0, %v887_v45  ;;  %v1000_v40 = vld [vmem:[#allocation3 + $0xb8] sm:$0xff] }
  0xd1   :  { %v851_v53 = vpop.xlane.xlu0 %850  ;;  %921 = vst.msk [vmem:[#allocation3 + $0xd8] sm:$0xff] %vm54_vm0, %v888_v9  ;;  %1127 = vperm.xlu0 %1810, %v1000_v40  }
  0xd2   :  { %1092 = vperm.xlu1 %1811, %v993_v36   ;;  %v889_v56 = vadd.f32 %v851_v53, %v697_v60  ;;  %v854_v26 = vpop.xlane.xlu1 %853 }
  0xd3   :  { %v1001_v11 = vld [vmem:[#allocation3 + $0xc0] sm:$0xff]  ;;  %v890_v29 = vadd.f32 %v854_v26, %v698_v55 }
  0xd4   :  { %922 = vst.msk [vmem:[#allocation3 + $0xe0] sm:$0xff] %vm54_vm0, %v889_v56  ;;  %v1002_v27 = vld [vmem:[#allocation3 + $0xc8] sm:$0xff] }
  0xd5   :  { %v857_v23 = vpop.xlane.xlu0 %856  ;;  %1137 = vperm.xlu0 %1810, %v1002_v27   ;;  %923 = vst.msk [vmem:[#allocation3 + $0xe8] sm:$0xff] %vm54_vm0, %v890_v29 }
  0xd6   :  { %1102 = vperm.xlu1 %1811, %v995_v50   ;;  %v891_v2 = vadd.f32 %v857_v23, %v699_v62  ;;  %v860_v34 = vpop.xlane.xlu1 %859 }
  0xd7   :  { %v1003_v6 = vld [vmem:[#allocation3 + $0xd0] sm:$0xff]  ;;  %v892_v36 = vadd.f32 %v860_v34, %v700_v31 }
  0xd8   :  { %924 = vst.msk [vmem:[#allocation3 + $0xf0] sm:$0xff] %vm54_vm0, %v891_v2  ;;  %v1004_v35 = vld [vmem:[#allocation3 + $0xd8] sm:$0xff] }
  0xd9   :  { %1147 = vperm.xlu0 %1810, %v1004_v35   ;;  %925 = vst.msk [vmem:[#allocation3 + $0xf8] sm:$0xff] %vm54_vm0, %v892_v36 }
  0xda   :  { %1112 = vperm.xlu1 %1811, %v997_v63  }
  0xdb   :  { %v1005_v17 = vld [vmem:[#allocation3 + $0xe0] sm:$0xff] }
  0xdc   :  { %v1006_v54 = vld [vmem:[#allocation3 + $0xe8] sm:$0xff] }
  0xdd   :  { %1157 = vperm.xlu0 %1810, %v1006_v54  }
  0xde   :  { %1122 = vperm.xlu1 %1811, %v999_v4  }
  0xdf   :  { %v1007_v24 = vld [vmem:[#allocation3 + $0xf0] sm:$0xff] }
  0xe0   :  { %v1008_v0 = vld [vmem:[#allocation3 + $0xf8] sm:$0xff] }
  0xe1   :  { %1167 = vperm.xlu0 %1810, %v1008_v0  }
  0xe2   :  { %1132 = vperm.xlu1 %1811, %v1001_v11  }
  0xe6   :  { %1142 = vperm.xlu1 %1811, %v1003_v6  }
  0xea   :  { %1152 = vperm.xlu1 %1811, %v1005_v17  }
  0xee   :  { %1162 = vperm.xlu1 %1811, %v1007_v24  }
  0xf5   :  { %v1536_v20 = vpop.f32.mrb[0].mxu0  ;;  %v1608_v33 = vpop.f32.mrb[0].mxu1 }
  0xf6   :  { %v1537_v18 = vpop.f32.mrb[1].mxu0  ;;  %v1609_v8 = vpop.f32.mrb[1].mxu1 }
  0xf7   :  { %v1538_v37 = vadd.f32 %v1537_v18, %v1536_v20  ;;  %v1539_v19 = vpop.f32.mrb[2].mxu0  ;;  %v2333_v21 = vadd.f32 %v1609_v8, %v1608_v33  ;;  %v1611_v22 = vpop.f32.mrb[2].mxu1 }
  0xf8   :  { %v1540_v57 = vpop.f32.mrb[3].mxu0  ;;  %v1612_v28 = vpop.f32.mrb[3].mxu1 }
  0xf9   :  { %v1541_v12 = vadd.f32 %v1540_v57, %v1539_v19  ;;  %1712 = vmatprep.mubr.f32.mxu1 %v1538_v37  ;;  %v2335_v30 = vadd.f32 %v1612_v28, %v1611_v22 }
  0xfb   :  { %1713 = vmatmul.mubr.f32.vlgmr.msra.gmra.mrb[16].mxu1 %v1541_v12 }
  0xfd   :  { %v1542_v32 = vpop.f32.mrb[4].mxu0  ;;  %v1614_v44 = vpop.f32.mrb[4].mxu1 }
  0xfe   :  { %v1543_v41 = vpop.f32.mrb[5].mxu0  ;;  %v1615_v49 = vpop.f32.mrb[5].mxu1 }
  0xff   :  { %v1544_v42 = vadd.f32 %v1543_v41, %v1542_v32  ;;  %v1545_v43 = vpop.f32.mrb[6].mxu0  ;;  %v2339_v60 = vadd.f32 %v1615_v49, %v1614_v44  ;;  %v1617_v50 = vpop.f32.mrb[6].mxu1 }
 0x100   :  { %v1546_v45 = vpop.f32.mrb[7].mxu0  ;;  %v1618_v52 = vpop.f32.mrb[7].mxu1 }
 0x101   :  { %v1547_v51 = vadd.f32 %v1546_v45, %v1545_v43  ;;  %1715 = vmatprep.mubr.f32.mxu1 %v1544_v42  ;;  %v2341_v53 = vadd.f32 %v1618_v52, %v1617_v50 }
 0x103   :  { %1716 = vmatmul.mubr.f32.gmra.mrb[18].mxu1 %v1547_v51 }
 0x105   :  { %v1548_v56 = vpop.f32.mrb[8].mxu0  ;;  %v1620_v63 = vpop.f32.mrb[8].mxu1 }
 0x106   :  { %v1549_v58 = vpop.f32.mrb[9].mxu0  ;;  %v1621_v1 = vpop.f32.mrb[9].mxu1 }
 0x107   :  { %v1550_v59 = vadd.f32 %v1549_v58, %v1548_v56  ;;  %v1551_v62 = vpop.f32.mrb[10].mxu0  ;;  %v2343_v3 = vadd.f32 %v1621_v1, %v1620_v63  ;;  %v1623_v25 = vpop.f32.mrb[10].mxu1 }
 0x108   :  { %v1552_v23 = vpop.f32.mrb[11].mxu0  ;;  %v1624_v4 = vpop.f32.mrb[11].mxu1 }
 0x109   :  { %v1553_v2 = vadd.f32 %v1552_v23, %v1551_v62  ;;  %1718 = vmatprep.mubr.f32.mxu1 %v1550_v59  ;;  %v2345_v10 = vadd.f32 %v1624_v4, %v1623_v25 }
 0x10b   :  { %1719 = vmatmul.mubr.f32.gmra.mrb[20].mxu1 %v1553_v2 }
 0x10d   :  { %v1554_v47 = vpop.f32.mrb[12].mxu0  ;;  %v1626_v13 = vpop.f32.mrb[12].mxu1 }
 0x10e   :  { %v1555_v61 = vpop.f32.mrb[13].mxu0  ;;  %v1627_v48 = vpop.f32.mrb[13].mxu1 }
 0x10f   :  { %v1556_v5 = vadd.f32 %v1555_v61, %v1554_v47  ;;  %v1557_v11 = vpop.f32.mrb[14].mxu0  ;;  %v2347_v6 = vadd.f32 %v1627_v48, %v1626_v13  ;;  %v1629_v46 = vpop.f32.mrb[14].mxu1 }
 0x110   :  { %v1558_v14 = vpop.f32.mrb[15].mxu0  ;;  %v1630_v15 = vpop.f32.mrb[15].mxu1 }
 0x111   :  { %v1559_v38 = vadd.f32 %v1558_v14, %v1557_v11  ;;  %1721 = vmatprep.mubr.f32.mxu1 %v1556_v5  ;;  %v2349_v16 = vadd.f32 %v1630_v15, %v1629_v46 }
 0x113   :  { %1722 = vmatmul.mubr.f32.gmra.mrb[22].mxu1 %v1559_v38 }
 0x115   :  { %v1560_v7 = vpop.f32.mrb[16].mxu0 }
 0x116   :  { %v1561_v17 = vpop.f32.mrb[17].mxu0 }
 0x117   :  { %v1562_v39 = vadd.f32 %v1561_v17, %v1560_v7  ;;  %v1563_v9 = vpop.f32.mrb[18].mxu0 }
 0x118   :  { %v1564_v20 = vpop.f32.mrb[19].mxu0 }
 0x119   :  { %v1565_v40 = vadd.f32 %v1564_v20, %v1563_v9  ;;  %1724 = vmatprep.mubr.f32.mxu1 %v1562_v39 }
 0x11b   :  { %1725 = vmatmul.mubr.f32.gmra.mrb[24].mxu1 %v1565_v40 }
 0x11d   :  { %v1566_v18 = vpop.f32.mrb[20].mxu0 }
 0x11e   :  { %v1567_v24 = vpop.f32.mrb[21].mxu0 }
 0x11f   :  { %v1568_v37 = vadd.f32 %v1567_v24, %v1566_v18  ;;  %v1569_v19 = vpop.f32.mrb[22].mxu0 }
 0x120   :  { %v1570_v33 = vpop.f32.mrb[23].mxu0 }
 0x121   :  { %v1571_v55 = vadd.f32 %v1570_v33, %v1569_v19  ;;  %1727 = vmatprep.mubr.f32.mxu1 %v1568_v37 }
 0x123   :  { %1728 = vmatmul.mubr.f32.gmra.mrb[26].mxu1 %v1571_v55 }
 0x125   :  { %v1572_v57 = vpop.f32.mrb[24].mxu0  ;;  %v1018_v5 = vpop.permute.xlu1 %1017 }
 0x126   :  { %v1573_v8 = vpop.f32.mrb[25].mxu0 }
 0x127   :  { %v1574_v12 = vadd.f32 %v1573_v8, %v1572_v57  ;;  %v1575_v22 = vpop.f32.mrb[26].mxu0 }
 0x128   :  { %v1576_v26 = vpop.f32.mrb[27].mxu0 }
 0x129   :  { %v1577_v27 = vadd.f32 %v1576_v26, %v1575_v22  ;;  %1730 = vmatprep.mubr.f32.mxu1 %v1574_v12  ;;  %v1023_v11 = vpop.permute.xlu1 %1022 }
 0x12b   :  { %1731 = vmatmul.mubr.f32.gmra.mrb[28].mxu1 %v1577_v27 }
 0x12d   :  { %v1578_v28 = vpop.f32.mrb[28].mxu0  ;;  %v1028_v13 = vpop.permute.xlu1 %1027 }
 0x12e   :  { %v1579_v29 = vpop.f32.mrb[29].mxu0 }
 0x12f   :  { %v1580_v31 = vadd.f32 %v1579_v29, %v1578_v28  ;;  %v1581_v32 = vpop.f32.mrb[30].mxu0 }
 0x130   :  { %v1582_v34 = vpop.f32.mrb[31].mxu0 }
 0x131   :  { %v1583_v35 = vadd.f32 %v1582_v34, %v1581_v32  ;;  %1733 = vmatprep.mubr.f32.mxu1 %v1580_v31  ;;  %v1033_v48 = vpop.permute.xlu1 %1032 }
 0x133   :  { %1734 = vmatmul.mubr.f32.gmra.mrb[30].mxu1 %v1583_v35 }
 0x135   :  { %v1584_v41 = vpop.f32.mrb[32].mxu0  ;;  %v1038_v15 = vpop.permute.xlu1 %1037 }
 0x136   :  { %v1585_v36 = vpop.f32.mrb[33].mxu0 }
 0x137   :  { %v1586_v42 = vadd.f32 %v1585_v36, %v1584_v41  ;;  %v1587_v43 = vpop.f32.mrb[34].mxu0 }
 0x138   :  { %v1588_v44 = vpop.f32.mrb[35].mxu0 }
 0x139   :  { %v1589_v45 = vadd.f32 %v1588_v44, %v1587_v43  ;;  %1736 = vmatprep.mubr.f32.mxu1 %v1586_v42  ;;  %v1043_v40 = vpop.permute.xlu1 %1042 }
 0x13b   :  { %1737 = vmatmul.mubr.f32.gmra.mrb[32].mxu1 %v1589_v45 }
 0x13d   :  { %v1590_v49 = vpop.f32.mrb[36].mxu0  ;;  %v1048_v33 = vpop.permute.xlu1 %1047 }
 0x13e   :  { %v1591_v51 = vpop.f32.mrb[37].mxu0 }
 0x13f   :  { %v1592_v50 = vadd.f32 %v1591_v51, %v1590_v49  ;;  %v1593_v52 = vpop.f32.mrb[38].mxu0 }
 0x140   :  { %v1594_v54 = vpop.f32.mrb[39].mxu0 }
 0x141   :  { %v1595_v56 = vadd.f32 %v1594_v54, %v1593_v52  ;;  %1739 = vmatprep.mubr.f32.mxu1 %v1592_v50  ;;  %v1053_v28 = vpop.permute.xlu1 %1052 }
 0x143   :  { %1740 = vmatmul.mubr.f32.gmra.mrb[34].mxu1 %v1595_v56 }
 0x145   :  { %v1596_v58 = vpop.f32.mrb[40].mxu0  ;;  %v1063_v43 = vpop.permute.xlu1 %1062 }
 0x146   :  { %v1597_v59 = vpop.f32.mrb[41].mxu0 }
 0x147   :  { %v1598_v62 = vadd.f32 %v1597_v59, %v1596_v58  ;;  %v1599_v63 = vpop.f32.mrb[42].mxu0 }
 0x148   :  { %v1600_v0 = vpop.f32.mrb[43].mxu0 }
 0x149   :  { %v1601_v23 = vadd.f32 %v1600_v0, %v1599_v63  ;;  %1742 = vmatprep.mubr.f32.mxu1 %v1598_v62  ;;  %v1073_v56 = vpop.permute.xlu1 %1072 }
 0x14b   :  { %1743 = vmatmul.mubr.f32.gmra.mrb[36].mxu1 %v1601_v23 }
 0x14d   :  { %v1602_v1 = vpop.f32.mrb[44].mxu0 }
 0x14e   :  { %v1603_v2 = vpop.f32.mrb[45].mxu0 }
 0x14f   :  { %v1604_v25 = vadd.f32 %v1603_v2, %v1602_v1  ;;  %v1605_v4 = vpop.f32.mrb[46].mxu0  ;;  %v1083_v1 = vpop.permute.xlu1 %1082 }
 0x150   :  { %v1606_v47 = vpop.f32.mrb[47].mxu0 }
 0x151   :  { %v1607_v61 = vadd.f32 %v1606_v47, %v1605_v4  ;;  %1745 = vmatprep.mubr.f32.mxu1 %v1604_v25 }
 0x153   :  { %1746 = vmatmul.mubr.f32.gmra.mrb[38].mxu1 %v1607_v61 }
 0x154   :  { %1748 = vmatprep.mubr.f32.mxu1 %v2333_v21  ;;  %v2362_v21 = vld [vmem:[%s2495_s3] ss:$0 sm:$0xff] }
 0x155   :  { %v1178_v46 = vmul.f32 %v2362_v21, %v1023_v11  ;;  %v1181_v9 = vmul.f32 %v2362_v21, %v1038_v15  ;;  %v1180_v20 = vmul.f32 %v2362_v21, %v1033_v48  ;;  %v1183_v55 = vmul.f32 %v2362_v21, %v1048_v33 }
 0x156   :  { %v1182_v57 = vmul.f32 %v2362_v21, %v1043_v40  ;;  %v1184_v31 = vmul.f32 %v2362_v21, %v1053_v28  ;;  %v1186_v44 = vmul.f32 %v2362_v21, %v1063_v43  ;;  %v1188_v58 = vmul.f32 %v2362_v21, %v1073_v56 }
 0x157   :  { %1749 = vmatmul.mubr.f32.gmra.mrb[40].mxu1 %v2335_v30  ;;  %v1013_v30 = vpop.permute.xlu0 %1012  ;;  %v1190_v25 = vmul.f32 %v2362_v21, %v1083_v1 }
 0x158   :  { %1751 = vmatprep.mubr.f32.mxu1 %v2339_v60  ;;  %v1177_v60 = vmul.f32 %v2362_v21, %v1018_v5 }
 0x15b   :  { %1752 = vmatmul.mubr.f32.gmra.mrb[42].mxu1 %v2341_v53  ;;  %v1176_v53 = vmul.f32 %v2362_v21, %v1013_v30  ;;  %v1058_v27 = vpop.permute.xlu0 %1057  ;;  %v1093_v30 = vpop.permute.xlu1 %1092 }
 0x15c   :  { %1754 = vmatprep.mubr.f32.mxu1 %v2343_v3  ;;  %v1185_v29 = vmul.f32 %v2362_v21, %v1058_v27 }
 0x15f   :  { %1755 = vmatmul.mubr.f32.gmra.mrb[44].mxu1 %v2345_v10  ;;  %v1068_v36 = vpop.permute.xlu0 %1067 }
 0x160   :  { %1757 = vmatprep.mubr.f32.mxu1 %v2347_v6  ;;  %v1179_v6 = vmul.f32 %v2362_v21, %v1028_v13  ;;  %v1187_v42 = vmul.f32 %v2362_v21, %v1068_v36 }
 0x163   :  { %1758 = vmatmul.mubr.f32.gmra.mrb[46].mxu1 %v2349_v16  ;;  %v1078_v52 = vpop.permute.xlu0 %1077 }
 0x164   :  { %v1189_v54 = vmul.f32 %v2362_v21, %v1078_v52 }
 0x167   :  { %v1088_v23 = vpop.permute.xlu0 %1087 }
 0x168   :  { %v1191_v2 = vmul.f32 %v2362_v21, %v1088_v23 }
 0x16b   :  { %v1098_v5 = vpop.permute.xlu0 %1097 }
 0x16c   :  { %v1193_v13 = vmul.f32 %v2362_v21, %v1098_v5 }
 0x1ce   :  { %v1714_v3 = vpop.f32.mrb[16].mxu1 }
 0x1cf   :  { %v1280_v14 = vadd.f32 %v1714_v3, %v1177_v60  ;;  %v1274_v10 = vpop.f32.mrb[17].mxu1  ;;  %v1192_v60 = vmul.f32 %v2362_v21, %v1093_v30 }
 0x1d0   :  { %v1275_v38 = vadd.f32 %v1274_v10, %v1176_v53  ;;  %v1108_v53 = vpop.permute.xlu0 %1107 }
 0x1d1   :  { %1434 = vst [vmem:[%s2496_s4 + $0x8] sm:$0xff] %v1280_v14  ;;  %v1103_v14 = vpop.permute.xlu1 %1102  ;;  %v1195_v15 = vmul.f32 %v2362_v21, %v1108_v53 }
 0x1d2   :  { %1433 = vst [vmem:[%s2496_s4] sm:$0xff] %v1275_v38 }
 0x1d6   :  { %v1717_v16 = vpop.f32.mrb[18].mxu1 }
 0x1d7   :  { %v1290_v7 = vadd.f32 %v1717_v16, %v1179_v6  ;;  %v1284_v17 = vpop.f32.mrb[19].mxu1  ;;  %v1118_v6 = vpop.permute.xlu0 %1117  ;;  %v1194_v16 = vmul.f32 %v2362_v21, %v1103_v14 }
 0x1d8   :  { %v1285_v39 = vadd.f32 %v1284_v17, %v1178_v46  ;;  %v1113_v46 = vpop.permute.xlu1 %1112 }
 0x1d9   :  { %1436 = vst [vmem:[%s2496_s4 + $0x18] sm:$0xff] %v1290_v7 }
 0x1da   :  { %1435 = vst [vmem:[%s2496_s4 + $0x10] sm:$0xff] %v1285_v39 }
 0x1dc   :  { %v1123_v40 = vpop.permute.xlu1 %1122 }
 0x1de   :  { %v1720_v18 = vpop.f32.mrb[20].mxu1 }
 0x1df   :  { %v1300_v24 = vadd.f32 %v1720_v18, %v1181_v9  ;;  %v1294_v37 = vpop.f32.mrb[21].mxu1  ;;  %v1197_v18 = vmul.f32 %v2362_v21, %v1118_v6 }
 0x1e0   :  { %v1295_v19 = vadd.f32 %v1294_v37, %v1180_v20  ;;  %v1128_v20 = vpop.permute.xlu0 %1127 }
 0x1e1   :  { %1438 = vst [vmem:[%s2496_s4 + $0x28] sm:$0xff] %v1300_v24  ;;  %v1196_v24 = vmul.f32 %v2362_v21, %v1113_v46 }
 0x1e2   :  { %1437 = vst [vmem:[%s2496_s4 + $0x20] sm:$0xff] %v1295_v19 }
 0x1e6   :  { %v1723_v8 = vpop.f32.mrb[22].mxu1 }
 0x1e7   :  { %v1310_v12 = vadd.f32 %v1723_v8, %v1183_v55  ;;  %v1304_v22 = vpop.f32.mrb[23].mxu1  ;;  %v1138_v55 = vpop.permute.xlu0 %1137 }
 0x1e8   :  { %v1305_v26 = vadd.f32 %v1304_v22, %v1182_v57  ;;  %v1133_v8 = vpop.permute.xlu1 %1132  ;;  %v1198_v22 = vmul.f32 %v2362_v21, %v1123_v40 }
 0x1e9   :  { %1440 = vst [vmem:[%s2496_s4 + $0x38] sm:$0xff] %v1310_v12  ;;  %v1199_v12 = vmul.f32 %v2362_v21, %v1128_v20 }
 0x1ea   :  { %1439 = vst [vmem:[%s2496_s4 + $0x30] sm:$0xff] %v1305_v26 }
 0x1eb   :  { %v1148_v26 = vpop.permute.xlu0 %1147 }
 0x1ec   :  { %v1143_v28 = vpop.permute.xlu1 %1142 }
 0x1ee   :  { %v1726_v32 = vpop.f32.mrb[24].mxu1 }
 0x1ef   :  { %v1320_v34 = vadd.f32 %v1726_v32, %v1185_v29  ;;  %v1314_v35 = vpop.f32.mrb[25].mxu1  ;;  %v1158_v43 = vpop.permute.xlu0 %1157 }
 0x1f0   :  { %v1315_v41 = vadd.f32 %v1314_v35, %v1184_v31  ;;  %v1200_v35 = vmul.f32 %v2362_v21, %v1133_v8 }
 0x1f1   :  { %1442 = vst [vmem:[%s2496_s4 + $0x48] sm:$0xff] %v1320_v34  ;;  %v1201_v34 = vmul.f32 %v2362_v21, %v1138_v55 }
 0x1f2   :  { %1441 = vst [vmem:[%s2496_s4 + $0x40] sm:$0xff] %v1315_v41 }
 0x1f6   :  { %v1729_v45 = vpop.f32.mrb[26].mxu1 }
 0x1f7   :  { %v1330_v49 = vadd.f32 %v1729_v45, %v1187_v42  ;;  %v1324_v51 = vpop.f32.mrb[27].mxu1  ;;  %v1153_v45 = vpop.permute.xlu1 %1152 }
 0x1f8   :  { %v1325_v50 = vadd.f32 %v1324_v51, %v1186_v44  ;;  %v1202_v51 = vmul.f32 %v2362_v21, %v1143_v28 }
 0x1f9   :  { %1444 = vst [vmem:[%s2496_s4 + $0x58] sm:$0xff] %v1330_v49  ;;  %v1203_v49 = vmul.f32 %v2362_v21, %v1148_v26 }
 0x1fa   :  { %1443 = vst [vmem:[%s2496_s4 + $0x50] sm:$0xff] %v1325_v50 }
 0x1fe   :  { %v1732_v59 = vpop.f32.mrb[28].mxu1 }
 0x1ff   :  { %v1340_v62 = vadd.f32 %v1732_v59, %v1189_v54  ;;  %v1334_v63 = vpop.f32.mrb[29].mxu1  ;;  %v1204_v59 = vmul.f32 %v2362_v21, %v1153_v45 }
 0x200   :  { %v1335_v0 = vadd.f32 %v1334_v63, %v1188_v58  ;;  %v1205_v58 = vmul.f32 %v2362_v21, %v1158_v43 }
 0x201   :  { %1446 = vst [vmem:[%s2496_s4 + $0x68] sm:$0xff] %v1340_v62  ;;  %v1168_v62 = vpop.permute.xlu0 %1167 }
 0x202   :  { %1445 = vst [vmem:[%s2496_s4 + $0x60] sm:$0xff] %v1335_v0  ;;  %v1163_v0 = vpop.permute.xlu1 %1162 }
 0x206   :  { %v1735_v4 = vpop.f32.mrb[30].mxu1 }
 0x207   :  { %v1350_v47 = vadd.f32 %v1735_v4, %v1191_v2  ;;  %v1344_v61 = vpop.f32.mrb[31].mxu1  ;;  %v1206_v4 = vmul.f32 %v2362_v21, %v1163_v0 }
 0x208   :  { %v1345_v11 = vadd.f32 %v1344_v61, %v1190_v25  ;;  %v1207_v25 = vmul.f32 %v2362_v21, %v1168_v62 }
 0x209   :  { %1448 = vst [vmem:[%s2496_s4 + $0x78] sm:$0xff] %v1350_v47 }
 0x20a   :  { %1447 = vst [vmem:[%s2496_s4 + $0x70] sm:$0xff] %v1345_v11 }
 0x20e   :  { %v1738_v3 = vpop.f32.mrb[32].mxu1 }
 0x20f   :  { %v1360_v10 = vadd.f32 %v1738_v3, %v1193_v13  ;;  %v1354_v48 = vpop.f32.mrb[33].mxu1 }
 0x210   :  { %v1355_v38 = vadd.f32 %v1354_v48, %v1192_v60 }
 0x211   :  { %1450 = vst [vmem:[%s2496_s4 + $0x88] sm:$0xff] %v1360_v10 }
 0x212   :  { %1449 = vst [vmem:[%s2496_s4 + $0x80] sm:$0xff] %v1355_v38 }
 0x216   :  { %v1741_v7 = vpop.f32.mrb[34].mxu1 }
 0x217   :  { %v1370_v17 = vadd.f32 %v1741_v7, %v1195_v15  ;;  %v1364_v39 = vpop.f32.mrb[35].mxu1 }
 0x218   :  { %v1365_v9 = vadd.f32 %v1364_v39, %v1194_v16 }
 0x219   :  { %1452 = vst [vmem:[%s2496_s4 + $0x98] sm:$0xff] %v1370_v17 }
 0x21a   :  { %1451 = vst [vmem:[%s2496_s4 + $0x90] sm:$0xff] %v1365_v9 }
 0x21e   :  { %v1744_v37 = vpop.f32.mrb[36].mxu1 }
 0x21f   :  { %v1380_v19 = vadd.f32 %v1744_v37, %v1197_v18  ;;  %v1374_v33 = vpop.f32.mrb[37].mxu1 }
 0x220   :  { %v1375_v57 = vadd.f32 %v1374_v33, %v1196_v24 }
 0x221   :  { %1454 = vst [vmem:[%s2496_s4 + $0xa8] sm:$0xff] %v1380_v19 }
 0x222   :  { %1453 = vst [vmem:[%s2496_s4 + $0xa0] sm:$0xff] %v1375_v57 }
 0x226   :  { %v1747_v27 = vpop.f32.mrb[38].mxu1 }
 0x227   :  { %v1390_v29 = vadd.f32 %v1747_v27, %v1199_v12  ;;  %v1384_v31 = vpop.f32.mrb[39].mxu1 }
 0x228   :  { %v1385_v32 = vadd.f32 %v1384_v31, %v1198_v22 }
 0x229   :  { %1456 = vst [vmem:[%s2496_s4 + $0xb8] sm:$0xff] %v1390_v29 }
 0x22a   :  { %1455 = vst [vmem:[%s2496_s4 + $0xb0] sm:$0xff] %v1385_v32  ;;  %v1750_v41 = vpop.f32.mrb[40].mxu1 }
 0x22b   :  { %v1400_v36 = vadd.f32 %v1750_v41, %v1201_v34  ;;  %v1394_v42 = vpop.f32.mrb[41].mxu1 }
 0x22c   :  { %v1395_v44 = vadd.f32 %v1394_v42, %v1200_v35 }
 0x22d   :  { %1458 = vst [vmem:[%s2496_s4 + $0xc8] sm:$0xff] %v1400_v36 }
 0x22e   :  { %1457 = vst [vmem:[%s2496_s4 + $0xc0] sm:$0xff] %v1395_v44  ;;  %v1753_v50 = vpop.f32.mrb[42].mxu1 }
 0x22f   :  { %v1410_v52 = vadd.f32 %v1753_v50, %v1203_v49  ;;  %v1404_v54 = vpop.f32.mrb[43].mxu1 }
 0x230   :  { %v1405_v56 = vadd.f32 %v1404_v54, %v1202_v51 }
 0x231   :  { %1460 = vst [vmem:[%s2496_s4 + $0xd8] sm:$0xff] %v1410_v52 }
 0x232   :  { %1459 = vst [vmem:[%s2496_s4 + $0xd0] sm:$0xff] %v1405_v56  ;;  %v1756_v63 = vpop.f32.mrb[44].mxu1 }
 0x233   :  { %v1420_v23 = vadd.f32 %v1756_v63, %v1205_v58  ;;  %v1414_v1 = vpop.f32.mrb[45].mxu1 }
 0x234   :  { %v1415_v2 = vadd.f32 %v1414_v1, %v1204_v59 }
 0x235   :  { %1462 = vst [vmem:[%s2496_s4 + $0xe8] sm:$0xff] %v1420_v23 }
 0x236   :  { %1461 = vst [vmem:[%s2496_s4 + $0xe0] sm:$0xff] %v1415_v2  ;;  %v1759_v47 = vpop.f32.mrb[46].mxu1 }
 0x237   :  { %v1430_v61 = vadd.f32 %v1759_v47, %v1207_v25  ;;  %v1424_v5 = vpop.f32.mrb[47].mxu1 }
 0x238   :  { %v1425_v11 = vadd.f32 %v1424_v5, %v1206_v4 }
 0x239   :  { %1464 = vst [vmem:[%s2496_s4 + $0xf8] sm:$0xff] %v1430_v61 }
 0x23a   :  { %1463 = vst [vmem:[%s2496_s4 + $0xf0] sm:$0xff] %v1425_v11 }

// kernel: forward.2
= control target key start
LH: loop header
LB: loop body
LE: loop exit
PB: predicated region body
PF: predicated region fallthrough
CT: control target
= control target key end

     0   :  { %s1469_s1 = inlined_call_operand.vmem [shape: bf16[256,128], index: 1, kind: input, shape index: {}]   ;;  %s1470_s0 = inlined_call_operand.vmem [shape: bf16[256,256], index: 0, kind: input, shape index: {}]   ;;  %s1471_s2 = inlined_call_operand.vmem [shape: bf16[256,128], index: 2, kind: output, shape index: {}]  }
   0x1   :  { %v1198_v0 = vld [vmem:[%s1469_s1 + $0x40] sm:$0xff]   ;;  %v1200_v2 = vld [vmem:[%s1469_s1 + $0x48] sm:$0xff]   ;;  %v1202_v4 = vld [vmem:[%s1469_s1 + $0x50] sm:$0xff]  }
   0x2   :  { %v1199_v1 = vld [vmem:[%s1469_s1] sm:$0xff]   ;;  %1070 = vmatprep.subr.bf16.mxu0 %v1198_v0  ;;  %1182 = vmatprep.subr.bf16.mxu1 %v1198_v0  ;;  %v1201_v3 = vld [vmem:[%s1469_s1 + $0x8] sm:$0xff]   ;;  %v1203_v5 = vld [vmem:[%s1469_s1 + $0x10] sm:$0xff]  }
   0x3   :  { %1071 = vmatpush3.bf16.msra.mxu0 %v1199_v1  ;;  %1190 = vmatpush3.bf16.msra.mxu1 %v1199_v1  ;;  %v1204_v6 = vld [vmem:[%s1469_s1 + $0x58] sm:$0xff]   ;;  %v1206_v8 = vld [vmem:[%s1469_s1 + $0x60] sm:$0xff]   ;;  %v1208_v10 = vld [vmem:[%s1469_s1 + $0x68] sm:$0xff]  }
   0x4   :  { %1072 = vmatprep.subr.bf16.mxu0 %v1200_v2  ;;  %1183 = vmatprep.subr.bf16.mxu1 %v1200_v2  ;;  %v1205_v7 = vld [vmem:[%s1469_s1 + $0x18] sm:$0xff]   ;;  %v1207_v9 = vld [vmem:[%s1469_s1 + $0x20] sm:$0xff]   ;;  %v1209_v13 = vld [vmem:[%s1469_s1 + $0x28] sm:$0xff]  }
   0x5   :  { %v1216_v11 = vld [vmem:[%s1470_s0 + $0x4] ss:$8 sps:$4 sm:$0xff]   ;;  %v1210_v14 = vld [vmem:[%s1469_s1 + $0x70] sm:$0xff]   ;;  %v1212_v16 = vld [vmem:[%s1469_s1 + $0x78] sm:$0xff]  }
   0x6   :  { %v1219_v12 = vld [vmem:[%s1470_s0 + $0x84] ss:$8 sps:$4 sm:$0xff]   ;;  %437 = vmatprep.mubr.bf16.mxu0 %v1216_v11  ;;  %v1211_v15 = vld [vmem:[%s1469_s1 + $0x30] sm:$0xff]   ;;  %v1213_v17 = vld [vmem:[%s1469_s1 + $0x38] sm:$0xff]  }
   0x7   :  { %1073 = vmatpush3.bf16.msra.mxu0 %v1201_v3  ;;  %1191 = vmatpush3.bf16.msra.mxu1 %v1201_v3  ;;  %v1214_v18 = vld [vmem:[%s1470_s0] ss:$8 sps:$4 sm:$0xff]   ;;  %v1220_v20 = vld [vmem:[%s1470_s0 + $0x14] ss:$8 sps:$4 sm:$0xff]   ;;  %v1224_v22 = vld [vmem:[%s1470_s0 + $0x10] ss:$8 sps:$4 sm:$0xff]  }
   0x8   :  { %1074 = vmatprep.subr.bf16.mxu0 %v1202_v4  ;;  %1184 = vmatprep.subr.bf16.mxu1 %v1202_v4  ;;  %v1217_v19 = vld [vmem:[%s1470_s0 + $0x80] ss:$8 sps:$4 sm:$0xff]   ;;  %v1222_v21 = vld [vmem:[%s1470_s0 + $0x94] ss:$8 sps:$4 sm:$0xff]   ;;  %v1225_v23 = vld [vmem:[%s1470_s0 + $0x90] ss:$8 sps:$4 sm:$0xff]  }
   0x9   :  { %501 = vmatprep.mubr.bf16.mxu1 %v1219_v12  ;;  %v1226_v24 = vld [vmem:[%s1470_s0 + $0x24] ss:$8 sps:$4 sm:$0xff]   ;;  %v1230_v26 = vld [vmem:[%s1470_s0 + $0x20] ss:$8 sps:$4 sm:$0xff]   ;;  %v1232_v28 = vld [vmem:[%s1470_s0 + $0x34] ss:$8 sps:$4 sm:$0xff]  }
   0xa   :  { %v1228_v25 = vld [vmem:[%s1470_s0 + $0xa4] ss:$8 sps:$4 sm:$0xff]   ;;  %v1231_v27 = vld [vmem:[%s1470_s0 + $0xa0] ss:$8 sps:$4 sm:$0xff]   ;;  %v1234_v29 = vld [vmem:[%s1470_s0 + $0xb4] ss:$8 sps:$4 sm:$0xff]  }
   0xb   :  { %1075 = vmatpush3.bf16.msra.mxu0 %v1203_v5  ;;  %1192 = vmatpush3.bf16.msra.mxu1 %v1203_v5  ;;  %v1236_v30 = vld [vmem:[%s1470_s0 + $0x30] ss:$8 sps:$4 sm:$0xff]   ;;  %v1238_v32 = vld [vmem:[%s1470_s0 + $0x44] ss:$8 sps:$4 sm:$0xff]   ;;  %v1242_v34 = vld [vmem:[%s1470_s0 + $0x40] ss:$8 sps:$4 sm:$0xff]  }
   0xc   :  { %1076 = vmatprep.subr.bf16.mxu0 %v1204_v6  ;;  %1185 = vmatprep.subr.bf16.mxu1 %v1204_v6  ;;  %v1237_v31 = vld [vmem:[%s1470_s0 + $0xb0] ss:$8 sps:$4 sm:$0xff]   ;;  %v1240_v33 = vld [vmem:[%s1470_s0 + $0xc4] ss:$8 sps:$4 sm:$0xff]   ;;  %v1243_v35 = vld [vmem:[%s1470_s0 + $0xc0] ss:$8 sps:$4 sm:$0xff]  }
   0xd   :  { %v1244_v36 = vld [vmem:[%s1470_s0 + $0x54] ss:$8 sps:$4 sm:$0xff]   ;;  %v1248_v38 = vld [vmem:[%s1470_s0 + $0x50] ss:$8 sps:$4 sm:$0xff]   ;;  %v1250_v40 = vld [vmem:[%s1470_s0 + $0x64] ss:$8 sps:$4 sm:$0xff]  }
   0xe   :  { %v1246_v37 = vld [vmem:[%s1470_s0 + $0xd4] ss:$8 sps:$4 sm:$0xff]   ;;  %v1249_v39 = vld [vmem:[%s1470_s0 + $0xd0] ss:$8 sps:$4 sm:$0xff]   ;;  %v1252_v41 = vld [vmem:[%s1470_s0 + $0xe4] ss:$8 sps:$4 sm:$0xff]  }
   0xf   :  { %1077 = vmatpush3.bf16.msra.mxu0 %v1205_v7  ;;  %1193 = vmatpush3.bf16.msra.mxu1 %v1205_v7  ;;  %v1254_v42 = vld [vmem:[%s1470_s0 + $0x60] ss:$8 sps:$4 sm:$0xff]   ;;  %v1256_v44 = vld [vmem:[%s1470_s0 + $0x74] ss:$8 sps:$4 sm:$0xff]   ;;  %v1260_v46 = vld [vmem:[%s1470_s0 + $0x70] ss:$8 sps:$4 sm:$0xff]  }
  0x10   :  { %1078 = vmatprep.subr.bf16.mxu0 %v1206_v8  ;;  %1186 = vmatprep.subr.bf16.mxu1 %v1206_v8  ;;  %v1255_v43 = vld [vmem:[%s1470_s0 + $0xe0] ss:$8 sps:$4 sm:$0xff]   ;;  %v1258_v45 = vld [vmem:[%s1470_s0 + $0xf4] ss:$8 sps:$4 sm:$0xff]   ;;  %v1261_v47 = vld [vmem:[%s1470_s0 + $0xf0] ss:$8 sps:$4 sm:$0xff]  }
  0x13   :  { %1079 = vmatpush3.bf16.msra.mxu0 %v1207_v9  ;;  %1194 = vmatpush3.bf16.msra.mxu1 %v1207_v9 }
  0x14   :  { %1080 = vmatprep.subr.bf16.mxu0 %v1208_v10  ;;  %1187 = vmatprep.subr.bf16.mxu1 %v1208_v10 }
  0x17   :  { %1081 = vmatpush3.bf16.msra.mxu0 %v1209_v13  ;;  %1195 = vmatpush3.bf16.msra.mxu1 %v1209_v13 }
  0x18   :  { %1082 = vmatprep.subr.bf16.mxu0 %v1210_v14  ;;  %1188 = vmatprep.subr.bf16.mxu1 %v1210_v14 }
  0x1b   :  { %1083 = vmatpush3.bf16.msra.mxu0 %v1211_v15  ;;  %1196 = vmatpush3.bf16.msra.mxu1 %v1211_v15 }
  0x1c   :  { %1084 = vmatprep.subr.bf16.mxu0 %v1212_v16  ;;  %1189 = vmatprep.subr.bf16.mxu1 %v1212_v16 }
  0x1f   :  { %1085 = vmatpush3.bf16.msra.mxu0 %v1213_v17  ;;  %1197 = vmatpush3.bf16.msra.mxu1 %v1213_v17 }
  0x22   :  { %438 = vmatmul.mubr.bf16.vlgmr.msra.gmra.mrb[0].mxu0 %v1214_v18  ;;  %502 = vmatmul.mubr.bf16.vlgmr.msra.gmra.mrb[0].mxu1 %v1217_v19 }
  0x23   :  { %445 = vmatprep.mubr.bf16.mxu0 %v1220_v20  ;;  %509 = vmatprep.mubr.bf16.mxu1 %v1222_v21 }
  0x2a   :  { %446 = vmatmul.mubr.bf16.gmra.mrb[4].mxu0 %v1224_v22  ;;  %510 = vmatmul.mubr.bf16.gmra.mrb[4].mxu1 %v1225_v23 }
  0x2b   :  { %453 = vmatprep.mubr.bf16.mxu0 %v1226_v24  ;;  %517 = vmatprep.mubr.bf16.mxu1 %v1228_v25 }
  0x32   :  { %454 = vmatmul.mubr.bf16.gmra.mrb[8].mxu0 %v1230_v26  ;;  %518 = vmatmul.mubr.bf16.gmra.mrb[8].mxu1 %v1231_v27 }
  0x33   :  { %461 = vmatprep.mubr.bf16.mxu0 %v1232_v28  ;;  %525 = vmatprep.mubr.bf16.mxu1 %v1234_v29 }
  0x3a   :  { %462 = vmatmul.mubr.bf16.gmra.mrb[12].mxu0 %v1236_v30  ;;  %526 = vmatmul.mubr.bf16.gmra.mrb[12].mxu1 %v1237_v31 }
  0x3b   :  { %469 = vmatprep.mubr.bf16.mxu0 %v1238_v32  ;;  %533 = vmatprep.mubr.bf16.mxu1 %v1240_v33 }
  0x42   :  { %470 = vmatmul.mubr.bf16.gmra.mrb[16].mxu0 %v1242_v34  ;;  %534 = vmatmul.mubr.bf16.gmra.mrb[16].mxu1 %v1243_v35 }
  0x43   :  { %477 = vmatprep.mubr.bf16.mxu0 %v1244_v36  ;;  %541 = vmatprep.mubr.bf16.mxu1 %v1246_v37 }
  0x4a   :  { %478 = vmatmul.mubr.bf16.gmra.mrb[20].mxu0 %v1248_v38  ;;  %542 = vmatmul.mubr.bf16.gmra.mrb[20].mxu1 %v1249_v39 }
  0x4b   :  { %485 = vmatprep.mubr.bf16.mxu0 %v1250_v40  ;;  %549 = vmatprep.mubr.bf16.mxu1 %v1252_v41 }
  0x52   :  { %486 = vmatmul.mubr.bf16.gmra.mrb[24].mxu0 %v1254_v42  ;;  %550 = vmatmul.mubr.bf16.gmra.mrb[24].mxu1 %v1255_v43 }
  0x53   :  { %493 = vmatprep.mubr.bf16.mxu0 %v1256_v44  ;;  %557 = vmatprep.mubr.bf16.mxu1 %v1258_v45 }
  0x5a   :  { %494 = vmatmul.mubr.bf16.gmra.mrb[28].mxu0 %v1260_v46  ;;  %558 = vmatmul.mubr.bf16.gmra.mrb[28].mxu1 %v1261_v47 }
  0xf5   :  { %v1086_v48 = vpop.f32.mrb[0].mxu0  ;;  %v1134_v49 = vpop.f32.mrb[0].mxu1 }
  0xf6   :  { %v1087_v50 = vpop.f32.mrb[1].mxu0  ;;  %v1135_v51 = vpop.f32.mrb[1].mxu1 }
  0xf7   :  { %v1088_v52 = vadd.f32 %v1087_v50, %v1086_v48  ;;  %v1136_v53 = vadd.f32 %v1135_v51, %v1134_v49  ;;  %v1089_v54 = vpop.f32.mrb[2].mxu0  ;;  %v1137_v55 = vpop.f32.mrb[2].mxu1 }
  0xf8   :  { %v1090_v56 = vpop.f32.mrb[3].mxu0  ;;  %v1138_v57 = vpop.f32.mrb[3].mxu1 }
  0xf9   :  { %v1091_v58 = vadd.f32 %v1090_v56, %v1089_v54  ;;  %v1139_v59 = vadd.f32 %v1138_v57, %v1137_v55  ;;  %v665_v60 = vmax.f32 %v1088_v52, 0.0  ;;  %v681_v61 = vmax.f32 %v1136_v53, 0.0 }
  0xfb   :  { %v666_v62 = vmax.f32 %v1091_v58, 0.0  ;;  %v682_v63 = vmax.f32 %v1139_v59, 0.0 }
  0xfd   :  { %v978_v0 = vpack.c.bf16 %v666_v62, %v665_v60  ;;  %v1018_v1 = vpack.c.bf16 %v682_v63, %v681_v61  ;;  %v1092_v2 = vpop.f32.mrb[4].mxu0  ;;  %v1140_v3 = vpop.f32.mrb[4].mxu1 }
  0xfe   :  { %v1093_v4 = vpop.f32.mrb[5].mxu0  ;;  %v1141_v5 = vpop.f32.mrb[5].mxu1 }
  0xff   :  { %979 = vst [vmem:[%s1471_s2] sm:$0xff] %v978_v0   ;;  %1062 = vst [vmem:[%s1471_s2 + $0x40] sm:$0xff] %v1018_v1   ;;  %v1094_v6 = vadd.f32 %v1093_v4, %v1092_v2  ;;  %v1142_v7 = vadd.f32 %v1141_v5, %v1140_v3  ;;  %v1095_v8 = vpop.f32.mrb[6].mxu0  ;;  %v1143_v9 = vpop.f32.mrb[6].mxu1 }
 0x100   :  { %v1096_v10 = vpop.f32.mrb[7].mxu0  ;;  %v1144_v11 = vpop.f32.mrb[7].mxu1 }
 0x101   :  { %v1097_v12 = vadd.f32 %v1096_v10, %v1095_v8  ;;  %v1145_v13 = vadd.f32 %v1144_v11, %v1143_v9  ;;  %v667_v14 = vmax.f32 %v1094_v6, 0.0  ;;  %v683_v15 = vmax.f32 %v1142_v7, 0.0 }
 0x103   :  { %v668_v16 = vmax.f32 %v1097_v12, 0.0  ;;  %v684_v17 = vmax.f32 %v1145_v13, 0.0 }
 0x105   :  { %v983_v18 = vpack.c.bf16 %v668_v16, %v667_v14  ;;  %v1023_v19 = vpack.c.bf16 %v684_v17, %v683_v15  ;;  %v1098_v20 = vpop.f32.mrb[8].mxu0  ;;  %v1146_v21 = vpop.f32.mrb[8].mxu1 }
 0x106   :  { %v1099_v22 = vpop.f32.mrb[9].mxu0  ;;  %v1147_v23 = vpop.f32.mrb[9].mxu1 }
 0x107   :  { %1055 = vst [vmem:[%s1471_s2 + $0x8] sm:$0xff] %v983_v18   ;;  %1063 = vst [vmem:[%s1471_s2 + $0x48] sm:$0xff] %v1023_v19   ;;  %v1100_v24 = vadd.f32 %v1099_v22, %v1098_v20  ;;  %v1148_v25 = vadd.f32 %v1147_v23, %v1146_v21  ;;  %v1101_v26 = vpop.f32.mrb[10].mxu0  ;;  %v1149_v27 = vpop.f32.mrb[10].mxu1 }
 0x108   :  { %v1102_v28 = vpop.f32.mrb[11].mxu0  ;;  %v1150_v29 = vpop.f32.mrb[11].mxu1 }
 0x109   :  { %v1103_v30 = vadd.f32 %v1102_v28, %v1101_v26  ;;  %v1151_v31 = vadd.f32 %v1150_v29, %v1149_v27  ;;  %v669_v32 = vmax.f32 %v1100_v24, 0.0  ;;  %v685_v33 = vmax.f32 %v1148_v25, 0.0 }
 0x10b   :  { %v670_v34 = vmax.f32 %v1103_v30, 0.0  ;;  %v686_v35 = vmax.f32 %v1151_v31, 0.0 }
 0x10d   :  { %v988_v36 = vpack.c.bf16 %v670_v34, %v669_v32  ;;  %v1028_v37 = vpack.c.bf16 %v686_v35, %v685_v33  ;;  %v1104_v38 = vpop.f32.mrb[12].mxu0  ;;  %v1152_v39 = vpop.f32.mrb[12].mxu1 }
 0x10e   :  { %v1105_v40 = vpop.f32.mrb[13].mxu0  ;;  %v1153_v41 = vpop.f32.mrb[13].mxu1 }
 0x10f   :  { %1056 = vst [vmem:[%s1471_s2 + $0x10] sm:$0xff] %v988_v36   ;;  %1064 = vst [vmem:[%s1471_s2 + $0x50] sm:$0xff] %v1028_v37   ;;  %v1106_v42 = vadd.f32 %v1105_v40, %v1104_v38  ;;  %v1154_v43 = vadd.f32 %v1153_v41, %v1152_v39  ;;  %v1107_v44 = vpop.f32.mrb[14].mxu0  ;;  %v1155_v45 = vpop.f32.mrb[14].mxu1 }
 0x110   :  { %v1108_v46 = vpop.f32.mrb[15].mxu0  ;;  %v1156_v47 = vpop.f32.mrb[15].mxu1 }
 0x111   :  { %v1109_v48 = vadd.f32 %v1108_v46, %v1107_v44  ;;  %v1157_v49 = vadd.f32 %v1156_v47, %v1155_v45  ;;  %v671_v50 = vmax.f32 %v1106_v42, 0.0  ;;  %v687_v51 = vmax.f32 %v1154_v43, 0.0 }
 0x113   :  { %v672_v52 = vmax.f32 %v1109_v48, 0.0  ;;  %v688_v53 = vmax.f32 %v1157_v49, 0.0 }
 0x115   :  { %v993_v54 = vpack.c.bf16 %v672_v52, %v671_v50  ;;  %v1033_v55 = vpack.c.bf16 %v688_v53, %v687_v51  ;;  %v1110_v56 = vpop.f32.mrb[16].mxu0  ;;  %v1158_v57 = vpop.f32.mrb[16].mxu1 }
 0x116   :  { %v1111_v58 = vpop.f32.mrb[17].mxu0  ;;  %v1159_v59 = vpop.f32.mrb[17].mxu1 }
 0x117   :  { %1057 = vst [vmem:[%s1471_s2 + $0x18] sm:$0xff] %v993_v54   ;;  %1065 = vst [vmem:[%s1471_s2 + $0x58] sm:$0xff] %v1033_v55   ;;  %v1112_v60 = vadd.f32 %v1111_v58, %v1110_v56  ;;  %v1160_v61 = vadd.f32 %v1159_v59, %v1158_v57  ;;  %v1113_v62 = vpop.f32.mrb[18].mxu0  ;;  %v1161_v63 = vpop.f32.mrb[18].mxu1 }
 0x118   :  { %v1114_v0 = vpop.f32.mrb[19].mxu0  ;;  %v1162_v1 = vpop.f32.mrb[19].mxu1 }
 0x119   :  { %v1115_v2 = vadd.f32 %v1114_v0, %v1113_v62  ;;  %v1163_v3 = vadd.f32 %v1162_v1, %v1161_v63  ;;  %v673_v4 = vmax.f32 %v1112_v60, 0.0  ;;  %v689_v5 = vmax.f32 %v1160_v61, 0.0 }
 0x11b   :  { %v674_v6 = vmax.f32 %v1115_v2, 0.0  ;;  %v690_v7 = vmax.f32 %v1163_v3, 0.0 }
 0x11d   :  { %v998_v8 = vpack.c.bf16 %v674_v6, %v673_v4  ;;  %v1038_v9 = vpack.c.bf16 %v690_v7, %v689_v5  ;;  %v1116_v10 = vpop.f32.mrb[20].mxu0  ;;  %v1164_v11 = vpop.f32.mrb[20].mxu1 }
 0x11e   :  { %v1117_v12 = vpop.f32.mrb[21].mxu0  ;;  %v1165_v13 = vpop.f32.mrb[21].mxu1 }
 0x11f   :  { %1058 = vst [vmem:[%s1471_s2 + $0x20] sm:$0xff] %v998_v8   ;;  %1066 = vst [vmem:[%s1471_s2 + $0x60] sm:$0xff] %v1038_v9   ;;  %v1118_v14 = vadd.f32 %v1117_v12, %v1116_v10  ;;  %v1166_v15 = vadd.f32 %v1165_v13, %v1164_v11  ;;  %v1119_v16 = vpop.f32.mrb[22].mxu0  ;;  %v1167_v17 = vpop.f32.mrb[22].mxu1 }
 0x120   :  { %v1120_v18 = vpop.f32.mrb[23].mxu0  ;;  %v1168_v19 = vpop.f32.mrb[23].mxu1 }
 0x121   :  { %v1121_v20 = vadd.f32 %v1120_v18, %v1119_v16  ;;  %v1169_v21 = vadd.f32 %v1168_v19, %v1167_v17  ;;  %v675_v22 = vmax.f32 %v1118_v14, 0.0  ;;  %v691_v23 = vmax.f32 %v1166_v15, 0.0 }
 0x123   :  { %v676_v24 = vmax.f32 %v1121_v20, 0.0  ;;  %v692_v25 = vmax.f32 %v1169_v21, 0.0 }
 0x125   :  { %v1003_v26 = vpack.c.bf16 %v676_v24, %v675_v22  ;;  %v1043_v27 = vpack.c.bf16 %v692_v25, %v691_v23  ;;  %v1122_v28 = vpop.f32.mrb[24].mxu0  ;;  %v1170_v29 = vpop.f32.mrb[24].mxu1 }
 0x126   :  { %v1123_v30 = vpop.f32.mrb[25].mxu0  ;;  %v1171_v31 = vpop.f32.mrb[25].mxu1 }
 0x127   :  { %1059 = vst [vmem:[%s1471_s2 + $0x28] sm:$0xff] %v1003_v26   ;;  %1067 = vst [vmem:[%s1471_s2 + $0x68] sm:$0xff] %v1043_v27   ;;  %v1124_v32 = vadd.f32 %v1123_v30, %v1122_v28  ;;  %v1172_v33 = vadd.f32 %v1171_v31, %v1170_v29  ;;  %v1125_v34 = vpop.f32.mrb[26].mxu0  ;;  %v1173_v35 = vpop.f32.mrb[26].mxu1 }
 0x128   :  { %v1126_v36 = vpop.f32.mrb[27].mxu0  ;;  %v1174_v37 = vpop.f32.mrb[27].mxu1 }
 0x129   :  { %v1127_v38 = vadd.f32 %v1126_v36, %v1125_v34  ;;  %v1175_v39 = vadd.f32 %v1174_v37, %v1173_v35  ;;  %v677_v40 = vmax.f32 %v1124_v32, 0.0  ;;  %v693_v41 = vmax.f32 %v1172_v33, 0.0 }
 0x12b   :  { %v678_v42 = vmax.f32 %v1127_v38, 0.0  ;;  %v694_v43 = vmax.f32 %v1175_v39, 0.0 }
 0x12d   :  { %v1008_v44 = vpack.c.bf16 %v678_v42, %v677_v40  ;;  %v1048_v45 = vpack.c.bf16 %v694_v43, %v693_v41  ;;  %v1128_v46 = vpop.f32.mrb[28].mxu0  ;;  %v1176_v47 = vpop.f32.mrb[28].mxu1 }
 0x12e   :  { %v1129_v48 = vpop.f32.mrb[29].mxu0  ;;  %v1177_v49 = vpop.f32.mrb[29].mxu1 }
 0x12f   :  { %1060 = vst [vmem:[%s1471_s2 + $0x30] sm:$0xff] %v1008_v44   ;;  %1068 = vst [vmem:[%s1471_s2 + $0x70] sm:$0xff] %v1048_v45   ;;  %v1130_v50 = vadd.f32 %v1129_v48, %v1128_v46  ;;  %v1178_v51 = vadd.f32 %v1177_v49, %v1176_v47  ;;  %v1131_v52 = vpop.f32.mrb[30].mxu0  ;;  %v1179_v53 = vpop.f32.mrb[30].mxu1 }
 0x130   :  { %v1132_v54 = vpop.f32.mrb[31].mxu0  ;;  %v1180_v55 = vpop.f32.mrb[31].mxu1 }
 0x131   :  { %v1133_v56 = vadd.f32 %v1132_v54, %v1131_v52  ;;  %v1181_v57 = vadd.f32 %v1180_v55, %v1179_v53  ;;  %v679_v58 = vmax.f32 %v1130_v50, 0.0  ;;  %v695_v59 = vmax.f32 %v1178_v51, 0.0 }
 0x133   :  { %v680_v60 = vmax.f32 %v1133_v56, 0.0  ;;  %v696_v61 = vmax.f32 %v1181_v57, 0.0 }
 0x135   :  { %v1013_v62 = vpack.c.bf16 %v680_v60, %v679_v58  ;;  %v1053_v63 = vpack.c.bf16 %v696_v61, %v695_v59 }
 0x137   :  { %1061 = vst [vmem:[%s1471_s2 + $0x38] sm:$0xff] %v1013_v62   ;;  %1069 = vst [vmem:[%s1471_s2 + $0x78] sm:$0xff] %v1053_v63  }

</bundles_post_ra>
